<compile_context>
chip_gen: v6e
topology: v6e:2x2x1
jax: 0.10.0
libtpu: 0.0.40
codegen_flags: <defaults>
</compile_context>

<pallas_src>
import jax
import jax.numpy as jnp
import numpy as np
from jax.experimental import pallas as pl
from jax.experimental.pallas import tpu as pltpu


# ---- packed small-parameter buffer layout (row offsets; columns documented inline) ---
_ROW_LN_G = 0      # cols [0, 32*H)  : LayerNorm gamma tiled over the H groups
_ROW_LN_B = 1      # cols [0, 32*H)  : LayerNorm beta  tiled over the H groups
_ROW_W1 = 2        # rows [2, 34): cols [0,28) conv-A weight (+bias col 27),
                   #              cols [28,92) Linear(32,64) weight (1/P folded in)
_ROW_POOL = 34     # rows [34, 34+B): cols [0, B*Q) 0/1 pooling validity mask


# ----------------------------- fused Pallas kernel -----------------------------------

def _make_fused_kernel(batch, H):
    HW = 32 * H
    Ho = H - 2
    Q = 32 * Ho - 2                 # patch columns per batch block (2 garbage lanes/row)
    NB = batch * Q

    def kernel(xf_ref, a01_ref, smalls_ref, bias_ref, w2u_ref, wl2_ref, o_ref, pat_s):
        f32 = jnp.float32
        cdims = (((1,), (1,)), ((), ()))          # contract last-with-last (A @ B^T)

        # ------------- LayerNorm(32) on the flattened (B*3, 32*H) rows ---------------
        # per-32-lane-group mean/var via MXU contractions with a 0/1 indicator (exact).
        xf = xf_ref[...]                          # (B*3, HW) f32
        a01 = a01_ref[...]                        # (HW, H)   0/1
        mu = jax.lax.dot_general(
            jnp.dot(xf, a01, preferred_element_type=f32), a01, cdims,
            preferred_element_type=f32) * (1.0 / 32.0)
        xc = xf - mu
        var = jax.lax.dot_general(
            jnp.dot(xc * xc, a01, preferred_element_type=f32), a01, cdims,
            preferred_element_type=f32) * (1.0 / 32.0)
        gam = smalls_ref[_ROW_LN_G:_ROW_LN_G + 1, 0:HW]
        bet = smalls_ref[_ROW_LN_B:_ROW_LN_B + 1, 0:HW]
        xn = xc * jax.lax.rsqrt(var + 1e-5) * gam + bet          # (B*3, HW) f32

        # ------------- Conv2d(3,32,3) + GELU + AvgPool + Linear(32,64) ---------------
        # lane-dense im2col in VMEM: pat[(i*3+j)*3 + c, b*Q + q] = xn[3b+c, 32*i+j+q];
        # row 27 = 1.0 folds the conv bias into the weight matrix.
        for b in range(batch):
            for t in range(9):
                i, j = t // 3, t % 3
                s = 32 * i + j
                pat_s[3 * t:3 * t + 3, b * Q:(b + 1) * Q] = xn[3 * b:3 * b + 3, s:s + Q]
        pat_s[27:28, :] = jnp.ones((1, NB), f32)

        w1e = smalls_ref[_ROW_W1:_ROW_W1 + 32, 0:28]             # (32, 28) f32
        h1 = jnp.dot(w1e, pat_s[...], preferred_element_type=f32)  # (32, NB) lane-dense
        # TODO(synk): torch nn.GELU() is the exact erf form; the tanh approximation is
        # used to guarantee Mosaic lowering (max abs diff ~1e-3, within tolerance).
        h1 = jax.nn.gelu(h1, approximate=True)
        # AdaptiveAvgPool2d((1,1)) as an MXU contraction with an exact 0/1 mask; the
        # 1/P mean scale is folded (f32) into wl1, its bias into the conv-B bias row.
        poolm = smalls_ref[_ROW_POOL:_ROW_POOL + batch, 0:NB]    # (B, NB) 0/1
        psum = jax.lax.dot_general(poolm, h1, cdims, preferred_element_type=f32)  # (B,32)
        wl1 = smalls_ref[_ROW_W1:_ROW_W1 + 32, 28:92]            # (32, 64) f32
        yA = jnp.dot(psum, wl1, preferred_element_type=f32)      # (B, 64)

        # ------------- rebuild_B on yA.view(B,4,4,4): conv folded to one matmul ------
        h2 = jnp.dot(yA.astype(jnp.bfloat16), w2u_ref[...],
                     preferred_element_type=f32) + bias_ref[0:1, :]       # (B, 1024)
        h2 = jax.nn.gelu(h2, approximate=True)
        # pool over the 4 conv-B positions: lane-aligned 256 slices; 0.25 folded in wl2.
        p2 = h2[:, 0:256] + h2[:, 256:512] + h2[:, 512:768] + h2[:, 768:1024]
        out = jnp.dot(p2.astype(jnp.bfloat16), wl2_ref[...],
                      preferred_element_type=f32) + bias_ref[1:2, 0:512]  # (B, 512)
        o_ref[...] = out

    return kernel


def fused_forward_pallas(xf, prep, batch, H):
    Q = 32 * (H - 2) - 2
    args = (xf, prep["a01"], prep["smalls"], prep["bias2"], prep["w2u"], prep["wl2s"])
    return pl.pallas_call(
        _make_fused_kernel(batch, H),
        out_shape=jax.ShapeDtypeStruct((batch, 512), jnp.float32),
        grid=(1,),                                   # whole (tiny) problem in one step
        in_specs=[pl.BlockSpec(a.shape, lambda i: (0, 0)) for a in args],
        out_specs=pl.BlockSpec((batch, 512), lambda i: (0, 0)),
        scratch_shapes=[pltpu.VMEM((28, batch * Q), jnp.float32)],
        compiler_params=pltpu.CompilerParams(
            # single grid step; nothing to shard across v7x's 2 TCs at this size.
            # TODO(synk): for large batch, add a leading 'parallel' batch grid axis.
            dimension_semantics=("arbitrary",)),
    )(*args)


def rebuild_forward(x, prep):
    # x: (B, 3, H, 32) NCHW.  Only host-side op is a free row-major reshape; LayerNorm,
    # im2col, both convs, pools and linears all run inside the single Pallas kernel.
    B, C, H, W = x.shape
    xf = x.reshape(B * C, H * W)
    return fused_forward_pallas(xf, prep, B, H)


# --------------------- parameter preparation (hoisted, once) -------------------------

def prepare_params(params, batch, in_hw):
    """Hoist all weight reshapes / transposes / scale+bias foldings out of the forward."""
    (ln_g, ln_b, W1, b1, WL1, bL1, W2, b2, WL2, bL2) = params
    H, W = in_hw
    assert W == 32, "LayerNorm(32) fixes the last dim to 32"
    Ho, Wo = H - 2, W - 2
    P = Ho * Wo
    HW = 32 * H
    Q = 32 * Ho - 2
    NB = batch * Q

    # 0/1 group indicator used by the in-kernel LayerNorm group sums.
    a01 = np.zeros((HW, H), np.float32)
    for g in range(H):
        a01[32 * g:32 * (g + 1), g] = 1.0

    # Conv2d(3,32,3) weight with k = (i*3+j)*3 + c ordering; conv bias as column 27.
    W1n = np.asarray(W1, np.float32)                         # (32, 3, 3, 3) = (o,c,i,j)
    w1e = np.zeros((32, 28), np.float32)
    for i in range(3):
        for j in range(3):
            for c in range(3):
                w1e[:, (i * 3 + j) * 3 + c] = W1n[:, c, i, j]
    w1e[:, 27] = np.asarray(b1, np.float32)

    # Pooling mask: exact 0/1 entries (no 1/P baked into a bf16 operand).
    pool = np.zeros((batch, NB), np.float32)
    for b in range(batch):
        for q in range(Q):
            if q % 32 < Wo:
                pool[b, b * Q + q] = 1.0
    assert pool.sum() == batch * P

    wl1s = np.asarray(WL1, np.float32).T / P                 # (32, 64), 1/P folded in

    # Conv2d(4,256,3) on the fixed 4x4x4 rebuild_B input unrolled to a dense matmul.
    W2n = np.asarray(W2, np.float32)                         # (256, 4, 3, 3)
    O, Ci, kh, kw = W2n.shape
    Hb = Wb = 4
    Hob, Wob = Hb - kh + 1, Wb - kw + 1                      # 2, 2
    w2u = np.zeros((Ci * Hb * Wb, Hob * Wob * O), np.float32)
    for oh in range(Hob):
        for ow in range(Wob):
            p = oh * Wob + ow
            for c in range(Ci):
                for i in range(kh):
                    for j in range(kw):
                        w2u[c * Hb * Wb + (oh + i) * Wb + (ow + j),
                            p * O:(p + 1) * O] = W2n[:, c, i, j]
    # rebuild_A's Linear bias pushed through the (linear) conv-B matmul -> one bias row.
    b2u_eff = np.tile(np.asarray(b2, np.float32), Hob * Wob) \
        + np.asarray(bL1, np.float32) @ w2u                  # (1024,)

    # Linear(256,512) with the 0.25 conv-B pooling scale folded in (f32).
    wl2s = 0.25 * np.asarray(WL2, np.float32).T              # (256, 512)

    # Packed small-parameter buffer (single DMA): LN affine, w1e | wl1s, pooling mask.
    ncol = ((max(HW, NB, 92) + 127) // 128) * 128
    smalls = np.zeros((_ROW_POOL + batch, ncol), np.float32)
    smalls[_ROW_LN_G, 0:HW] = np.tile(np.asarray(ln_g, np.float32), H)
    smalls[_ROW_LN_B, 0:HW] = np.tile(np.asarray(ln_b, np.float32), H)
    smalls[_ROW_W1:_ROW_W1 + 32, 0:28] = w1e
    smalls[_ROW_W1:_ROW_W1 + 32, 28:92] = wl1s
    smalls[_ROW_POOL:_ROW_POOL + batch, 0:NB] = pool

    # Packed bias buffer (single DMA): row 0 = effective conv-B bias, row 1 = bL2.
    bias2 = np.zeros((2, 1024), np.float32)
    bias2[0, :] = b2u_eff
    bias2[1, 0:512] = np.asarray(bL2, np.float32)

    bf16 = jnp.bfloat16
    return dict(
        a01=jnp.asarray(a01),
        smalls=jnp.asarray(smalls),
        bias2=jnp.asarray(bias2),
        w2u=jnp.asarray(w2u).astype(bf16),
        wl2s=jnp.asarray(wl2s).astype(bf16),
    )


# ------------------------------ reference (pure JAX, f32) -----------------------------

def im2col(x, kh, kw):
    # x: (B, C, H, W) -> (B, Ho*Wo, C*kh*kw), K-index ordering = c*kh*kw + i*kw + j
    B, C, H, W = x.shape
    Ho, Wo = H - kh + 1, W - kw + 1
    cols = []
    for i in range(kh):
        for j in range(kw):
            cols.append(x[:, :, i:i + Ho, j:j + Wo])      # (B, C, Ho, Wo)
    p = jnp.stack(cols, axis=2)                           # (B, C, kh*kw, Ho, Wo)
    p = p.reshape(B, C * kh * kw, Ho * Wo)
    return jnp.transpose(p, (0, 2, 1))                    # (B, Ho*Wo, C*kh*kw)


def forward_ref(x, params):
    (ln_g, ln_b, W1, b1, WL1, bL1, W2, b2, WL2, bL2) = params

    def conv(x, w, b):
        B, C, H, W = x.shape
        O, _, kh, kw = w.shape
        p = im2col(x, kh, kw)
        y = p @ w.reshape(O, -1).T + b
        return y.transpose(0, 2, 1).reshape(B, O, H - kh + 1, W - kw + 1)

    mu = x.mean(-1, keepdims=True)
    var = ((x - mu) ** 2).mean(-1, keepdims=True)
    xn = (x - mu) / jnp.sqrt(var + 1e-5) * ln_g + ln_b
    y = jax.nn.gelu(conv(xn, W1, b1), approximate=True)
    y = y.mean(axis=(2, 3)) @ WL1.T + bL1
    y = y.reshape(x.shape[0], 4, 4, 4)
    y = jax.nn.gelu(conv(y, W2, b2), approximate=True)
    y = y.mean(axis=(2, 3)) @ WL2.T + bL2
    return y


# --------------------------------- main -----------------------------------------------

if __name__ == "__main__":
    key = jax.random.PRNGKey(0)
    ks = jax.random.split(key, 11)

    # Parameter shapes mirror the PyTorch module's __init__ (deterministic init).
    ln_g = 1.0 + 0.1 * jax.random.normal(ks[0], (32,), jnp.float32)
    ln_b = 0.1 * jax.random.normal(ks[1], (32,), jnp.float32)
    W1 = 0.1 * jax.random.normal(ks[2], (32, 3, 3, 3), jnp.float32)    # Conv2d(3, 32, 3)
    b1 = 0.1 * jax.random.normal(ks[3], (32,), jnp.float32)
    WL1 = 0.1 * jax.random.normal(ks[4], (64, 32), jnp.float32)        # Linear(32, 64)
    bL1 = 0.1 * jax.random.normal(ks[5], (64,), jnp.float32)
    W2 = 0.05 * jax.random.normal(ks[6], (256, 4, 3, 3), jnp.float32)  # Conv2d(4, 256, 3)
    b2 = 0.05 * jax.random.normal(ks[7], (256,), jnp.float32)
    WL2 = 0.05 * jax.random.normal(ks[8], (512, 256), jnp.float32)     # Linear(256, 512)
    bL2 = 0.05 * jax.random.normal(ks[9], (512,), jnp.float32)
    params = (ln_g, ln_b, W1, b1, WL1, bL1, W2, b2, WL2, bL2)

    # Input: NCHW; LayerNorm(32) forces the last (W) dim to be 32.
    x = jax.random.normal(ks[10], (2, 3, 8, 32), jnp.float32)

    prep = prepare_params(params, batch=x.shape[0], in_hw=(x.shape[2], x.shape[3]))
    fwd = jax.jit(rebuild_forward)   # one XLA program: a free reshape + one pallas_call

    out = jax.block_until_ready(fwd(x, prep))
    ref = jax.block_until_ready(forward_ref(x, params))

    assert out.shape == (2, 512), out.shape
    max_err = float(jnp.max(jnp.abs(out - ref)))
    assert jnp.allclose(out, ref, rtol=1e-2, atol=1e-2), max_err
    print("KERNEL_OK")
</pallas_src>

<mosaic_0001>
module attributes {stable_mosaic.version = 11 : i64} {
  func.func @kernel(%arg0: i32, %arg1: memref<6x256xf32, #tpu.memory_space<vmem>>, %arg2: memref<256x8xf32, #tpu.memory_space<vmem>>, %arg3: memref<36x384xf32, #tpu.memory_space<vmem>>, %arg4: memref<2x1024xf32, #tpu.memory_space<vmem>>, %arg5: memref<64x1024xbf16, #tpu.memory_space<vmem>>, %arg6: memref<256x512xbf16, #tpu.memory_space<vmem>>, %arg7: memref<2x512xf32, #tpu.memory_space<vmem>>, %arg8: memref<28x380xf32, #tpu.memory_space<vmem>>) attributes {dimension_semantics = [#tpu.dimension_semantics<arbitrary>], iteration_bounds = array<i64: 1>, scalar_prefetch = 0 : i64, scratch_operands = 1 : i64, tpu.core_type = #tpu.core_type<tc>, window_params = [{pipeline_mode = #tpu.pipeline_mode<synchronous>, transform_indices = @transform_0, window_bounds = array<i64: 6, 256>}, {pipeline_mode = #tpu.pipeline_mode<synchronous>, transform_indices = @transform_1, window_bounds = array<i64: 256, 8>}, {pipeline_mode = #tpu.pipeline_mode<synchronous>, transform_indices = @transform_2, window_bounds = array<i64: 36, 384>}, {pipeline_mode = #tpu.pipeline_mode<synchronous>, transform_indices = @transform_3, window_bounds = array<i64: 2, 1024>}, {pipeline_mode = #tpu.pipeline_mode<synchronous>, transform_indices = @transform_4, window_bounds = array<i64: 64, 1024>}, {pipeline_mode = #tpu.pipeline_mode<synchronous>, transform_indices = @transform_5, window_bounds = array<i64: 256, 512>}, {pipeline_mode = #tpu.pipeline_mode<synchronous>, transform_indices = @transform_6, window_bounds = array<i64: 2, 512>}]} {
    %c0 = arith.constant 0 : index
    %c0_0 = arith.constant 0 : index
    %0 = vector.load %arg1[%c0, %c0_0] : memref<6x256xf32, #tpu.memory_space<vmem>>, vector<6x256xf32>
    %c0_1 = arith.constant 0 : index
    %c0_2 = arith.constant 0 : index
    %1 = vector.load %arg2[%c0_1, %c0_2] : memref<256x8xf32, #tpu.memory_space<vmem>>, vector<256x8xf32>
    %cst = arith.constant dense<0.000000e+00> : vector<6x8xf32>
    %2 = tpu.matmul %0, %1, %cst {dimension_numbers = #tpu.dot_dimension_numbers<[1], [0], [0], [1], [0, 0, 1, 1], [], []>} : vector<6x256xf32>, vector<256x8xf32>, vector<6x8xf32> -> vector<6x8xf32>
    %cst_3 = arith.constant dense<0.000000e+00> : vector<6x256xf32>
    %3 = tpu.matmul %2, %1, %cst_3 {dimension_numbers = #tpu.dot_dimension_numbers<[1], [1], [0], [0], [0, 0, 1, 0], [], []>} : vector<6x8xf32>, vector<256x8xf32>, vector<6x256xf32> -> vector<6x256xf32>
    %cst_4 = arith.constant 3.125000e-02 : f32
    %4 = vector.broadcast %cst_4 : f32 to vector<6x256xf32>
    %5 = arith.mulf %3, %4 : vector<6x256xf32>
    %6 = arith.subf %0, %5 : vector<6x256xf32>
    %7 = arith.mulf %6, %6 : vector<6x256xf32>
    %cst_5 = arith.constant dense<0.000000e+00> : vector<6x8xf32>
    %8 = tpu.matmul %7, %1, %cst_5 {dimension_numbers = #tpu.dot_dimension_numbers<[1], [0], [0], [1], [0, 0, 1, 1], [], []>} : vector<6x256xf32>, vector<256x8xf32>, vector<6x8xf32> -> vector<6x8xf32>
    %cst_6 = arith.constant dense<0.000000e+00> : vector<6x256xf32>
    %9 = tpu.matmul %8, %1, %cst_6 {dimension_numbers = #tpu.dot_dimension_numbers<[1], [1], [0], [0], [0, 0, 1, 0], [], []>} : vector<6x8xf32>, vector<256x8xf32>, vector<6x256xf32> -> vector<6x256xf32>
    %cst_7 = arith.constant 3.125000e-02 : f32
    %10 = vector.broadcast %cst_7 : f32 to vector<6x256xf32>
    %11 = arith.mulf %9, %10 : vector<6x256xf32>
    %c0_8 = arith.constant 0 : index
    %c0_9 = arith.constant 0 : index
    %12 = vector.load %arg3[%c0_8, %c0_9] : memref<36x384xf32, #tpu.memory_space<vmem>>, vector<1x256xf32>
    %c1 = arith.constant 1 : index
    %c0_10 = arith.constant 0 : index
    %13 = vector.load %arg3[%c1, %c0_10] : memref<36x384xf32, #tpu.memory_space<vmem>>, vector<1x256xf32>
    %cst_11 = arith.constant 9.99999974E-6 : f32
    %14 = vector.broadcast %cst_11 : f32 to vector<6x256xf32>
    %15 = arith.addf %11, %14 : vector<6x256xf32>
    %16 = math.rsqrt %15 : vector<6x256xf32>
    %17 = arith.mulf %6, %16 : vector<6x256xf32>
    %18 = vector.broadcast %12 : vector<1x256xf32> to vector<6x256xf32>
    %19 = arith.mulf %17, %18 : vector<6x256xf32>
    %20 = vector.broadcast %13 : vector<1x256xf32> to vector<6x256xf32>
    %21 = arith.addf %19, %20 : vector<6x256xf32>
    %22 = vector.extract_strided_slice %21 {offsets = [0, 0], sizes = [3, 190], strides = [1, 1]} : vector<6x256xf32> to vector<3x190xf32>
    %c0_12 = arith.constant 0 : index
    %c0_13 = arith.constant 0 : index
    %23 = vector.load %arg8[%c0_12, %c0_13] : memref<28x380xf32, #tpu.memory_space<vmem>>, vector<3x190xf32>
    tpu.vector_store %arg8[%c0_12, %c0_13], %22 {strides = array<i32>} : memref<28x380xf32, #tpu.memory_space<vmem>>, vector<3x190xf32>,
    %24 = vector.extract_strided_slice %21 {offsets = [0, 1], sizes = [3, 190], strides = [1, 1]} : vector<6x256xf32> to vector<3x190xf32>
    %c3 = arith.constant 3 : index
    %c0_14 = arith.constant 0 : index
    %25 = vector.load %arg8[%c3, %c0_14] : memref<28x380xf32, #tpu.memory_space<vmem>>, vector<3x190xf32>
    tpu.vector_store %arg8[%c3, %c0_14], %24 {strides = array<i32>} : memref<28x380xf32, #tpu.memory_space<vmem>>, vector<3x190xf32>,
    %26 = vector.extract_strided_slice %21 {offsets = [0, 2], sizes = [3, 190], strides = [1, 1]} : vector<6x256xf32> to vector<3x190xf32>
    %c6 = arith.constant 6 : index
    %c0_15 = arith.constant 0 : index
    %27 = vector.load %arg8[%c6, %c0_15] : memref<28x380xf32, #tpu.memory_space<vmem>>, vector<3x190xf32>
    tpu.vector_store %arg8[%c6, %c0_15], %26 {strides = array<i32>} : memref<28x380xf32, #tpu.memory_space<vmem>>, vector<3x190xf32>,
    %28 = vector.extract_strided_slice %21 {offsets = [0, 32], sizes = [3, 190], strides = [1, 1]} : vector<6x256xf32> to vector<3x190xf32>
    %c9 = arith.constant 9 : index
    %c0_16 = arith.constant 0 : index
    %29 = vector.load %arg8[%c9, %c0_16] : memref<28x380xf32, #tpu.memory_space<vmem>>, vector<3x190xf32>
    tpu.vector_store %arg8[%c9, %c0_16], %28 {strides = array<i32>} : memref<28x380xf32, #tpu.memory_space<vmem>>, vector<3x190xf32>,
    %30 = vector.extract_strided_slice %21 {offsets = [0, 33], sizes = [3, 190], strides = [1, 1]} : vector<6x256xf32> to vector<3x190xf32>
    %c12 = arith.constant 12 : index
    %c0_17 = arith.constant 0 : index
    %31 = vector.load %arg8[%c12, %c0_17] : memref<28x380xf32, #tpu.memory_space<vmem>>, vector<3x190xf32>
    tpu.vector_store %arg8[%c12, %c0_17], %30 {strides = array<i32>} : memref<28x380xf32, #tpu.memory_space<vmem>>, vector<3x190xf32>,
    %32 = vector.extract_strided_slice %21 {offsets = [0, 34], sizes = [3, 190], strides = [1, 1]} : vector<6x256xf32> to vector<3x190xf32>
    %c15 = arith.constant 15 : index
    %c0_18 = arith.constant 0 : index
    %33 = vector.load %arg8[%c15, %c0_18] : memref<28x380xf32, #tpu.memory_space<vmem>>, vector<3x190xf32>
    tpu.vector_store %arg8[%c15, %c0_18], %32 {strides = array<i32>} : memref<28x380xf32, #tpu.memory_space<vmem>>, vector<3x190xf32>,
    %34 = vector.extract_strided_slice %21 {offsets = [0, 64], sizes = [3, 190], strides = [1, 1]} : vector<6x256xf32> to vector<3x190xf32>
    %c18 = arith.constant 18 : index
    %c0_19 = arith.constant 0 : index
    %35 = vector.load %arg8[%c18, %c0_19] : memref<28x380xf32, #tpu.memory_space<vmem>>, vector<3x190xf32>
    tpu.vector_store %arg8[%c18, %c0_19], %34 {strides = array<i32>} : memref<28x380xf32, #tpu.memory_space<vmem>>, vector<3x190xf32>,
    %36 = vector.extract_strided_slice %21 {offsets = [0, 65], sizes = [3, 190], strides = [1, 1]} : vector<6x256xf32> to vector<3x190xf32>
    %c21 = arith.constant 21 : index
    %c0_20 = arith.constant 0 : index
    %37 = vector.load %arg8[%c21, %c0_20] : memref<28x380xf32, #tpu.memory_space<vmem>>, vector<3x190xf32>
    tpu.vector_store %arg8[%c21, %c0_20], %36 {strides = array<i32>} : memref<28x380xf32, #tpu.memory_space<vmem>>, vector<3x190xf32>,
    %38 = vector.extract_strided_slice %21 {offsets = [0, 66], sizes = [3, 190], strides = [1, 1]} : vector<6x256xf32> to vector<3x190xf32>
    %c24 = arith.constant 24 : index
    %c0_21 = arith.constant 0 : index
    %39 = vector.load %arg8[%c24, %c0_21] : memref<28x380xf32, #tpu.memory_space<vmem>>, vector<3x190xf32>
    tpu.vector_store %arg8[%c24, %c0_21], %38 {strides = array<i32>} : memref<28x380xf32, #tpu.memory_space<vmem>>, vector<3x190xf32>,
    %40 = vector.extract_strided_slice %21 {offsets = [3, 0], sizes = [3, 190], strides = [1, 1]} : vector<6x256xf32> to vector<3x190xf32>
    %c0_22 = arith.constant 0 : index
    %c190 = arith.constant 190 : index
    %41 = vector.load %arg8[%c0_22, %c190] : memref<28x380xf32, #tpu.memory_space<vmem>>, vector<3x190xf32>
    tpu.vector_store %arg8[%c0_22, %c190], %40 {strides = array<i32>} : memref<28x380xf32, #tpu.memory_space<vmem>>, vector<3x190xf32>,
    %42 = vector.extract_strided_slice %21 {offsets = [3, 1], sizes = [3, 190], strides = [1, 1]} : vector<6x256xf32> to vector<3x190xf32>
    %c3_23 = arith.constant 3 : index
    %c190_24 = arith.constant 190 : index
    %43 = vector.load %arg8[%c3_23, %c190_24] : memref<28x380xf32, #tpu.memory_space<vmem>>, vector<3x190xf32>
    tpu.vector_store %arg8[%c3_23, %c190_24], %42 {strides = array<i32>} : memref<28x380xf32, #tpu.memory_space<vmem>>, vector<3x190xf32>,
    %44 = vector.extract_strided_slice %21 {offsets = [3, 2], sizes = [3, 190], strides = [1, 1]} : vector<6x256xf32> to vector<3x190xf32>
    %c6_25 = arith.constant 6 : index
    %c190_26 = arith.constant 190 : index
    %45 = vector.load %arg8[%c6_25, %c190_26] : memref<28x380xf32, #tpu.memory_space<vmem>>, vector<3x190xf32>
    tpu.vector_store %arg8[%c6_25, %c190_26], %44 {strides = array<i32>} : memref<28x380xf32, #tpu.memory_space<vmem>>, vector<3x190xf32>,
    %46 = vector.extract_strided_slice %21 {offsets = [3, 32], sizes = [3, 190], strides = [1, 1]} : vector<6x256xf32> to vector<3x190xf32>
    %c9_27 = arith.constant 9 : index
    %c190_28 = arith.constant 190 : index
    %47 = vector.load %arg8[%c9_27, %c190_28] : memref<28x380xf32, #tpu.memory_space<vmem>>, vector<3x190xf32>
    tpu.vector_store %arg8[%c9_27, %c190_28], %46 {strides = array<i32>} : memref<28x380xf32, #tpu.memory_space<vmem>>, vector<3x190xf32>,
    %48 = vector.extract_strided_slice %21 {offsets = [3, 33], sizes = [3, 190], strides = [1, 1]} : vector<6x256xf32> to vector<3x190xf32>
    %c12_29 = arith.constant 12 : index
    %c190_30 = arith.constant 190 : index
    %49 = vector.load %arg8[%c12_29, %c190_30] : memref<28x380xf32, #tpu.memory_space<vmem>>, vector<3x190xf32>
    tpu.vector_store %arg8[%c12_29, %c190_30], %48 {strides = array<i32>} : memref<28x380xf32, #tpu.memory_space<vmem>>, vector<3x190xf32>,
    %50 = vector.extract_strided_slice %21 {offsets = [3, 34], sizes = [3, 190], strides = [1, 1]} : vector<6x256xf32> to vector<3x190xf32>
    %c15_31 = arith.constant 15 : index
    %c190_32 = arith.constant 190 : index
    %51 = vector.load %arg8[%c15_31, %c190_32] : memref<28x380xf32, #tpu.memory_space<vmem>>, vector<3x190xf32>
    tpu.vector_store %arg8[%c15_31, %c190_32], %50 {strides = array<i32>} : memref<28x380xf32, #tpu.memory_space<vmem>>, vector<3x190xf32>,
    %52 = vector.extract_strided_slice %21 {offsets = [3, 64], sizes = [3, 190], strides = [1, 1]} : vector<6x256xf32> to vector<3x190xf32>
    %c18_33 = arith.constant 18 : index
    %c190_34 = arith.constant 190 : index
    %53 = vector.load %arg8[%c18_33, %c190_34] : memref<28x380xf32, #tpu.memory_space<vmem>>, vector<3x190xf32>
    tpu.vector_store %arg8[%c18_33, %c190_34], %52 {strides = array<i32>} : memref<28x380xf32, #tpu.memory_space<vmem>>, vector<3x190xf32>,
    %54 = vector.extract_strided_slice %21 {offsets = [3, 65], sizes = [3, 190], strides = [1, 1]} : vector<6x256xf32> to vector<3x190xf32>
    %c21_35 = arith.constant 21 : index
    %c190_36 = arith.constant 190 : index
    %55 = vector.load %arg8[%c21_35, %c190_36] : memref<28x380xf32, #tpu.memory_space<vmem>>, vector<3x190xf32>
    tpu.vector_store %arg8[%c21_35, %c190_36], %54 {strides = array<i32>} : memref<28x380xf32, #tpu.memory_space<vmem>>, vector<3x190xf32>,
    %56 = vector.extract_strided_slice %21 {offsets = [3, 66], sizes = [3, 190], strides = [1, 1]} : vector<6x256xf32> to vector<3x190xf32>
    %c24_37 = arith.constant 24 : index
    %c190_38 = arith.constant 190 : index
    %57 = vector.load %arg8[%c24_37, %c190_38] : memref<28x380xf32, #tpu.memory_space<vmem>>, vector<3x190xf32>
    tpu.vector_store %arg8[%c24_37, %c190_38], %56 {strides = array<i32>} : memref<28x380xf32, #tpu.memory_space<vmem>>, vector<3x190xf32>,
    %cst_39 = arith.constant 1.000000e+00 : f32
    %58 = vector.broadcast %cst_39 : f32 to vector<1x380xf32>
    %c27 = arith.constant 27 : index
    %c0_40 = arith.constant 0 : index
    %59 = vector.load %arg8[%c27, %c0_40] : memref<28x380xf32, #tpu.memory_space<vmem>>, vector<1x380xf32>
    tpu.vector_store %arg8[%c27, %c0_40], %58 {strides = array<i32>} : memref<28x380xf32, #tpu.memory_space<vmem>>, vector<1x380xf32>,
    %c2 = arith.constant 2 : index
    %c0_41 = arith.constant 0 : index
    %60 = vector.load %arg3[%c2, %c0_41] : memref<36x384xf32, #tpu.memory_space<vmem>>, vector<32x28xf32>
    %c0_42 = arith.constant 0 : index
    %c0_43 = arith.constant 0 : index
    %61 = vector.load %arg8[%c0_42, %c0_43] : memref<28x380xf32, #tpu.memory_space<vmem>>, vector<28x380xf32>
    %cst_44 = arith.constant dense<0.000000e+00> : vector<32x380xf32>
    %62 = tpu.matmul %60, %61, %cst_44 {dimension_numbers = #tpu.dot_dimension_numbers<[1], [0], [0], [1], [0, 0, 1, 1], [], []>} : vector<32x28xf32>, vector<28x380xf32>, vector<32x380xf32> -> vector<32x380xf32>
    %63 = arith.mulf %62, %62 : vector<32x380xf32>
    %64 = arith.mulf %62, %63 : vector<32x380xf32>
    %cst_45 = arith.constant 4.471500e-02 : f32
    %65 = vector.broadcast %cst_45 : f32 to vector<32x380xf32>
    %66 = arith.mulf %65, %64 : vector<32x380xf32>
    %67 = arith.addf %62, %66 : vector<32x380xf32>
    %cst_46 = arith.constant 0.797884583 : f32
    %68 = vector.broadcast %cst_46 : f32 to vector<32x380xf32>
    %69 = arith.mulf %68, %67 : vector<32x380xf32>
    %70 = math.tanh %69 : vector<32x380xf32>
    %cst_47 = arith.constant 1.000000e+00 : f32
    %71 = vector.broadcast %cst_47 : f32 to vector<32x380xf32>
    %72 = arith.addf %71, %70 : vector<32x380xf32>
    %cst_48 = arith.constant 5.000000e-01 : f32
    %73 = vector.broadcast %cst_48 : f32 to vector<32x380xf32>
    %74 = arith.mulf %73, %72 : vector<32x380xf32>
    %75 = arith.mulf %62, %74 : vector<32x380xf32>
    %c34 = arith.constant 34 : index
    %c0_49 = arith.constant 0 : index
    %76 = vector.load %arg3[%c34, %c0_49] : memref<36x384xf32, #tpu.memory_space<vmem>>, vector<2x380xf32>
    %cst_50 = arith.constant dense<0.000000e+00> : vector<2x32xf32>
    %77 = tpu.matmul %76, %75, %cst_50 {dimension_numbers = #tpu.dot_dimension_numbers<[1], [1], [0], [0], [0, 0, 1, 0], [], []>} : vector<2x380xf32>, vector<32x380xf32>, vector<2x32xf32> -> vector<2x32xf32>
    %c2_51 = arith.constant 2 : index
    %c28 = arith.constant 28 : index
    %78 = vector.load %arg3[%c2_51, %c28] : memref<36x384xf32, #tpu.memory_space<vmem>>, vector<32x64xf32>
    %cst_52 = arith.constant dense<0.000000e+00> : vector<2x64xf32>
    %79 = tpu.matmul %77, %78, %cst_52 {dimension_numbers = #tpu.dot_dimension_numbers<[1], [0], [0], [1], [0, 0, 1, 1], [], []>} : vector<2x32xf32>, vector<32x64xf32>, vector<2x64xf32> -> vector<2x64xf32>
    %80 = arith.truncf %79 : vector<2x64xf32> to vector<2x64xbf16>
    %c0_53 = arith.constant 0 : index
    %c0_54 = arith.constant 0 : index
    %81 = vector.load %arg5[%c0_53, %c0_54] : memref<64x1024xbf16, #tpu.memory_space<vmem>>, vector<64x1024xbf16>
    %cst_55 = arith.constant dense<0.000000e+00> : vector<2x1024xf32>
    %82 = tpu.matmul %80, %81, %cst_55 {dimension_numbers = #tpu.dot_dimension_numbers<[1], [0], [0], [1], [0, 0, 1, 1], [], []>} : vector<2x64xbf16>, vector<64x1024xbf16>, vector<2x1024xf32> -> vector<2x1024xf32>
    %c0_56 = arith.constant 0 : index
    %c0_57 = arith.constant 0 : index
    %83 = vector.load %arg4[%c0_56, %c0_57] : memref<2x1024xf32, #tpu.memory_space<vmem>>, vector<1x1024xf32>
    %84 = vector.broadcast %83 : vector<1x1024xf32> to vector<2x1024xf32>
    %85 = arith.addf %82, %84 : vector<2x1024xf32>
    %86 = arith.mulf %85, %85 : vector<2x1024xf32>
    %87 = arith.mulf %85, %86 : vector<2x1024xf32>
    %cst_58 = arith.constant 4.471500e-02 : f32
    %88 = vector.broadcast %cst_58 : f32 to vector<2x1024xf32>
    %89 = arith.mulf %88, %87 : vector<2x1024xf32>
    %90 = arith.addf %85, %89 : vector<2x1024xf32>
    %cst_59 = arith.constant 0.797884583 : f32
    %91 = vector.broadcast %cst_59 : f32 to vector<2x1024xf32>
    %92 = arith.mulf %91, %90 : vector<2x1024xf32>
    %93 = math.tanh %92 : vector<2x1024xf32>
    %cst_60 = arith.constant 1.000000e+00 : f32
    %94 = vector.broadcast %cst_60 : f32 to vector<2x1024xf32>
    %95 = arith.addf %94, %93 : vector<2x1024xf32>
    %cst_61 = arith.constant 5.000000e-01 : f32
    %96 = vector.broadcast %cst_61 : f32 to vector<2x1024xf32>
    %97 = arith.mulf %96, %95 : vector<2x1024xf32>
    %98 = arith.mulf %85, %97 : vector<2x1024xf32>
    %99 = vector.extract_strided_slice %98 {offsets = [0, 0], sizes = [2, 256], strides = [1, 1]} : vector<2x1024xf32> to vector<2x256xf32>
    %100 = vector.extract_strided_slice %98 {offsets = [0, 256], sizes = [2, 256], strides = [1, 1]} : vector<2x1024xf32> to vector<2x256xf32>
    %101 = arith.addf %99, %100 : vector<2x256xf32>
    %102 = vector.extract_strided_slice %98 {offsets = [0, 512], sizes = [2, 256], strides = [1, 1]} : vector<2x1024xf32> to vector<2x256xf32>
    %103 = arith.addf %101, %102 : vector<2x256xf32>
    %104 = vector.extract_strided_slice %98 {offsets = [0, 768], sizes = [2, 256], strides = [1, 1]} : vector<2x1024xf32> to vector<2x256xf32>
    %105 = arith.addf %103, %104 : vector<2x256xf32>
    %106 = arith.truncf %105 : vector<2x256xf32> to vector<2x256xbf16>
    %c0_62 = arith.constant 0 : index
    %c0_63 = arith.constant 0 : index
    %107 = vector.load %arg6[%c0_62, %c0_63] : memref<256x512xbf16, #tpu.memory_space<vmem>>, vector<256x512xbf16>
    %cst_64 = arith.constant dense<0.000000e+00> : vector<2x512xf32>
    %108 = tpu.matmul %106, %107, %cst_64 {dimension_numbers = #tpu.dot_dimension_numbers<[1], [0], [0], [1], [0, 0, 1, 1], [], []>} : vector<2x256xbf16>, vector<256x512xbf16>, vector<2x512xf32> -> vector<2x512xf32>
    %c1_65 = arith.constant 1 : index
    %c0_66 = arith.constant 0 : index
    %109 = vector.load %arg4[%c1_65, %c0_66] : memref<2x1024xf32, #tpu.memory_space<vmem>>, vector<1x512xf32>
    %110 = vector.broadcast %109 : vector<1x512xf32> to vector<2x512xf32>
    %111 = arith.addf %108, %110 : vector<2x512xf32>
    %c0_67 = arith.constant 0 : index
    %c0_68 = arith.constant 0 : index
    %112 = vector.load %arg7[%c0_67, %c0_68] : memref<2x512xf32, #tpu.memory_space<vmem>>, vector<2x512xf32>
    tpu.vector_store %arg7[%c0_67, %c0_68], %111 {strides = array<i32>} : memref<2x512xf32, #tpu.memory_space<vmem>>, vector<2x512xf32>,
    return
  }
  func.func @transform_0(%arg0: i32) -> (i32, i32) {
    %c0_i32 = arith.constant 0 : i32
    %c0_i32_0 = arith.constant 0 : i32
    %c0_i32_1 = arith.constant 0 : i32
    return %c0_i32, %c0_i32_0 : i32, i32
  }
  func.func @transform_1(%arg0: i32) -> (i32, i32) {
    %c0_i32 = arith.constant 0 : i32
    %c0_i32_0 = arith.constant 0 : i32
    %c0_i32_1 = arith.constant 0 : i32
    return %c0_i32, %c0_i32_0 : i32, i32
  }
  func.func @transform_2(%arg0: i32) -> (i32, i32) {
    %c0_i32 = arith.constant 0 : i32
    %c0_i32_0 = arith.constant 0 : i32
    %c0_i32_1 = arith.constant 0 : i32
    return %c0_i32, %c0_i32_0 : i32, i32
  }
  func.func @transform_3(%arg0: i32) -> (i32, i32) {
    %c0_i32 = arith.constant 0 : i32
    %c0_i32_0 = arith.constant 0 : i32
    %c0_i32_1 = arith.constant 0 : i32
    return %c0_i32, %c0_i32_0 : i32, i32
  }
  func.func @transform_4(%arg0: i32) -> (i32, i32) {
    %c0_i32 = arith.constant 0 : i32
    %c0_i32_0 = arith.constant 0 : i32
    %c0_i32_1 = arith.constant 0 : i32
    return %c0_i32, %c0_i32_0 : i32, i32
  }
  func.func @transform_5(%arg0: i32) -> (i32, i32) {
    %c0_i32 = arith.constant 0 : i32
    %c0_i32_0 = arith.constant 0 : i32
    %c0_i32_1 = arith.constant 0 : i32
    return %c0_i32, %c0_i32_0 : i32, i32
  }
  func.func @transform_6(%arg0: i32) -> (i32, i32) {
    %c0_i32 = arith.constant 0 : i32
    %c0_i32_0 = arith.constant 0 : i32
    %c0_i32_1 = arith.constant 0 : i32
    return %c0_i32, %c0_i32_0 : i32, i32
  }
}

</mosaic_0001>

<bundles_post_ra>
// kernel: rebuild_forward.1
= control target key start
LH: loop header
LB: loop body
LE: loop exit
PB: predicated region body
PF: predicated region fallthrough
CT: control target
= control target key end

     0   :  { %11 = vsyncpa [#allocation4], 0  ;;  %s3768_s0 = inlined_call_operand.vmem [shape: f32[6,256], index: 0, kind: input, shape index: {}]   ;;  %s3769_s1 = inlined_call_operand.vmem [shape: f32[256,8], index: 1, kind: input, shape index: {}]   ;;  %s3770_s2 = inlined_call_operand.hbm [shape: f32[36,384], index: 2, kind: input, shape index: {}]   ;;  %s3771_s3 = inlined_call_operand.vmem [shape: f32[2,1024], index: 3, kind: input, shape index: {}]   ;;  %s3772_s4 = inlined_call_operand.vmem [shape: bf16[64,1024], index: 4, kind: input, shape index: {}]   ;;  %s3773_s5 = inlined_call_operand.hbm [shape: bf16[256,512], index: 5, kind: input, shape index: {}]   ;;  %s3774_s6 = inlined_call_operand.hbm [shape: f32[2,512], index: 6, kind: output, shape index: {}]  }
   0x1   :  { %12 = vsyncpa [#allocation7], 0 }
   0x2   :  { %13 = vsyncpa [#allocation5], 0  ;;  %s2949_s21 = smov [#allocation3]  }
   0x3   :  { %s23_s22 = sshll.u32 %s2949_s21, 4  ;;  %s24_s22 = int_to_ptr.vmem [resolvable:$true] %s23_s22 }
   0x4   :  { %s2891_s23 = scalar_lea.vmem %s24_s22, 1920  ;;  %p2896_p1 = scmp.lt.s32.totalorder %s24_s22, %s24_s22 }
   0x5   :  { %p2892_p0 = scmp.ne.s32.totalorder %s24_s22, %s2891_s23  ;;  %p2897_p2 = scmp.lt.s32.totalorder %s2891_s23, %s2891_s23 }
   0x7   :  { %p2898_p3 = por %p2897_p2, %p2896_p1 }
   0x9   :  { %p2899_p4 = pnand %p2898_p3, %p2892_p0 }
   0xb   :  { %2902 = shalt.err (!%p2899_p4)
}
   0xc   :  { %s2950_s24 = smov 384   ;;  %s2951_s25 = smov 24  }
   0xd   :  { %29 = dma.hbm_to_vmem [thread:$0]  %s3770_s2, 1920, %s24_s22, [#allocation4], %s2950_s24, %s2950_s24, %s2951_s25  }
   0xe   :  { %s2952_s28 = smov [#allocation6]  }
   0xf   :  { %s39_s29 = sshll.u32 %s2952_s28, 4  ;;  %s40_s29 = int_to_ptr.vmem [resolvable:$true] %s39_s29 }
  0x10   :  { %s2911_s30 = scalar_lea.vmem %s40_s29, 8192  ;;  %p2916_p6 = scmp.lt.s32.totalorder %s40_s29, %s40_s29 }
  0x11   :  { %p2912_p5 = scmp.ne.s32.totalorder %s40_s29, %s2911_s30  ;;  %p2917_p7 = scmp.lt.s32.totalorder %s2911_s30, %s2911_s30 }
  0x13   :  { %p2918_p8 = por %p2917_p7, %p2916_p6 }
  0x15   :  { %p2919_p9 = pnand %p2918_p8, %p2912_p5 }
  0x17   :  { %2922 = shalt.err (!%p2919_p9)
}
  0x18   :  { %s2953_s7 = smov 256   ;;  %s2954_s8 = smov 16  }
  0x19   :  { %45 = dma.hbm_to_vmem [thread:$0]  %s3773_s5, 8192, %s40_s29, [#allocation7], %s2953_s7, %s2953_s7, %s2954_s8  }
  0x1a   :  { %2943 = dma.done.wait [#allocation4], 1920  }
  0x1b   :  { %2944 = vsyncadd [#allocation4], 4294965376 }
  0x1c   :  { %2945 = dma.done.wait [#allocation7], 8192  }
  0x1d   :  { %2946 = vsyncadd [#allocation7], 4294959104  ;;  %vm157_vm0 = vcmask 64512   ;;  %v3021_v0 = vld [vmem:[%s3769_s1 + $0xf8] sm:$0xff]  ;;  %v3031_v2 = vld [vmem:[%s3769_s1 + $0xf0] sm:$0xff]  ;;  %v490_v53 = vlaneseq  ;;  %v2955_v60 = vmov 1.0  }
  0x1e   :  { %v3026_v1 = vld [vmem:[%s3769_s1 + $0x78] sm:$0xff]  ;;  %2523 = vmatprep.subr.mxu0 %v3021_v0  ;;  %v3037_v3 = vld [vmem:[%s3769_s1 + $0x70] sm:$0xff]  ;;  %2558 = vmatprep.subr.msk.mxu1 %vm157_vm0, %v3021_v0  ;;  %v3045_v4 = vld [vmem:[%s3769_s1 + $0xe8] sm:$0xff]  ;;  %vm516_vm2 = vcmask 501760   ;;  %s2958_s25 = smov 124   ;;  %s2959_s26 = smov 125  }
  0x1f   :  { %2524 = vmatpush3.msra.mxu0 %v3026_v1  ;;  %2559 = vmatpush3.xpose.msk.msra.mxu1 %vm157_vm0, %v3026_v1  ;;  %v3053_v5 = vld [vmem:[%s3769_s1 + $0x68] sm:$0xff]  ;;  %v3061_v6 = vld [vmem:[%s3769_s1 + $0xe0] sm:$0xff]  ;;  %v3073_v8 = vld [vmem:[%s3769_s1 + $0xd8] sm:$0xff]  ;;  %v3392_v55 = vshrl.u32 %v490_v53, 7  ;;  %vm741_vm1 = vcmp.lt.s32.totalorder %v490_v53, 380  ;;  %s2960_s27 = smov 64  }
  0x20   :  { %2525 = vmatprep.subr.mxu0 %v3031_v2  ;;  %2560 = vmatprep.subr.msk.mxu1 %vm157_vm0, %v3031_v2  ;;  %v3067_v7 = vld [vmem:[%s3769_s1 + $0x60] sm:$0xff]  ;;  %v3081_v9 = vld [vmem:[%s3769_s1 + $0x58] sm:$0xff]  ;;  %v3089_v10 = vld [vmem:[%s3769_s1 + $0xd0] sm:$0xff]  ;;  %744 = vst.msk [vmem:[#allocation2 + $0x4b] ss:$8 sm:$0x7] %vm741_vm1, %v2955_v60 }
  0x21   :  { %2526 = vmatpush3.msra.mxu0 %v3037_v3  ;;  %v3095_v11 = vld [vmem:[%s3769_s1 + $0x50] sm:$0xff]  ;;  %v3100_v12 = vld [vmem:[%s3769_s1 + $0xc8] sm:$0xff]  ;;  %v3111_v14 = vld [vmem:[%s3769_s1 + $0xc0] sm:$0xff]  ;;  %v3395_v56 = vsub.s32 0, %v3392_v55  ;;  %v3398_v58 = vsub.s32 1, %v3392_v55  ;;  %s2961_s28 = smov 94  }
  0x22   :  { %2527 = vmatprep.subr.mxu0 %v3045_v4  ;;  %v3106_v13 = vld [vmem:[%s3769_s1 + $0x48] sm:$0xff]  ;;  %v3124_v16 = vld [vmem:[%s3769_s1 + $0x40] sm:$0xff]  ;;  %v3131_v17 = vld [vmem:[%s3769_s1 + $0xb8] sm:$0xff]  ;;  %s2962_s29 = smov 28   ;;  %s2963_s30 = smov 63   ;;  %vm621_vm3 = vcmask 506880  }
  0x23   :  { %2528 = vmatpush3.msra.mxu0 %v3053_v5  ;;  %2561 = vmatpush3.xpose.msk.msra.mxu1 %vm157_vm0, %v3037_v3  ;;  %v3116_v15 = vld [vmem:[%s3768_s0 + $0x8] sm:$0x3f]  ;;  %v3139_v18 = vld [vmem:[%s3769_s1 + $0x38] sm:$0xff]  ;;  %v3145_v19 = vld [vmem:[%s3769_s1 + $0xb0] sm:$0xff]  ;;  %s2964_s7 = smov 96   ;;  %s2965_s8 = smov 95  }
  0x24   :  { %2529 = vmatprep.subr.mxu0 %v3061_v6  ;;  %2562 = vmatprep.subr.msk.mxu1 %vm157_vm0, %v3045_v4  ;;  %v3153_v20 = vld [vmem:[%s3769_s1 + $0x30] sm:$0xff]  ;;  %v3161_v21 = vld [vmem:[%s3769_s1 + $0xa8] sm:$0xff]  ;;  %v3173_v23 = vld [vmem:[%s3769_s1 + $0xa0] sm:$0xff]  ;;  %s2966_s9 = smov 60   ;;  %s2967_s10 = smov 30   ;;  %vm581_vm4 = vcmask 769024  }
  0x25   :  { %2530 = vmatpush3.msra.mxu0 %v3067_v7  ;;  %151 = vmatprep.mubr.f32.mxu0 %v3116_v15  ;;  %v3167_v22 = vld [vmem:[%s3769_s1 + $0x28] sm:$0xff]  ;;  %v3181_v24 = vld [vmem:[%s3769_s1 + $0x20] sm:$0xff]  ;;  %v3189_v25 = vld [vmem:[%s3769_s1 + $0x98] sm:$0xff]  ;;  %s2968_s2 = smov 29   ;;  %s2969_s11 = smov 127   ;;  %vm586_vm5 = vcmask 506887  }
  0x26   :  { %2531 = vmatprep.subr.mxu0 %v3073_v8  ;;  %v3195_v26 = vld [vmem:[%s3769_s1 + $0x18] sm:$0xff]  ;;  %v3201_v27 = vld [vmem:[%s3769_s1 + $0x90] sm:$0xff]  ;;  %v3217_v29 = vld [vmem:[%s3769_s1 + $0x88] sm:$0xff]  ;;  %s2971_s12 = smov 61   ;;  %vm589_vm6 = vcmask 500736   ;;  %vm698_vm7 = vcmask 1048055  }
  0x27   :  { %2532 = vmatpush3.msra.mxu0 %v3081_v9  ;;  %2563 = vmatpush3.xpose.msk.msra.mxu1 %vm157_vm0, %v3053_v5  ;;  %v3209_v28 = vld [vmem:[%s3769_s1 + $0x10] sm:$0xff]  ;;  %v3223_v30 = vld [vmem:[%s3769_s1 + $0x8] sm:$0xff]  ;;  %v3229_v31 = vld [vmem:[%s3769_s1 + $0x80] sm:$0xff]  ;;  %vm702_vm8 = vcmask 1041904   ;;  %vm610_vm9 = vcmask 515072   ;;  %vm615_vm10 = vcmask 506885  }
  0x28   :  { %2533 = vmatprep.subr.mxu0 %v3089_v10  ;;  %2564 = vmatprep.subr.msk.mxu1 %vm157_vm0, %v3061_v6  ;;  %v3237_v32 = vld [vmem:[%s3769_s1] sm:$0xff]  ;;  %s2957_s1 = smov 126   ;;  %vm3776_vm11 = vcmask 1009664   ;;  %vm3775_vm12 = vcmask 1014784   ;;  %vm634_vm13 = vcmask 1042928   ;;  %vm715_vm14 = vcmask 1011714  }
  0x29   :  { %2534 = vmatpush3.msra.mxu0 %v3095_v11  ;;  %v3245_v33 = vld [vmem:[%s3768_s0] sm:$0x3f]  ;;  %s2956_s0 = smov 62   ;;  %vm539_vm15 = vcmask 1031168   ;;  %vm602_vm1 = vcmask 503810   ;;  %s2972_s13 = smov 100  }
  0x2a   :  { %2535 = vmatprep.subr.mxu0 %v3100_v12  ;;  %v480_v57 = vld [vmem:[#allocation3] ss:$8 sm:$0x3]  ;;  %v482_v59 = vld [vmem:[#allocation3 + $0x1] ss:$8 sm:$0x3] }
  0x2b   :  { %2536 = vmatpush3.msra.mxu0 %v3106_v13  ;;  %2565 = vmatpush3.xpose.msk.msra.mxu1 %vm157_vm0, %v3067_v7  ;;  %v493_v61 = vrot.slane %v480_v57, %v3395_v56 }
  0x2c   :  { %2537 = vmatprep.subr.mxu0 %v3111_v14  ;;  %2566 = vmatprep.subr.msk.mxu1 %vm157_vm0, %v3073_v8 }
  0x2d   :  { %2538 = vmatpush3.msra.mxu0 %v3124_v16 }
  0x2e   :  { %2539 = vmatprep.subr.mxu0 %v3131_v17 }
  0x2f   :  { %2540 = vmatpush3.msra.mxu0 %v3139_v18  ;;  %2567 = vmatpush3.xpose.msk.msra.mxu1 %vm157_vm0, %v3081_v9 }
  0x30   :  { %2541 = vmatprep.subr.mxu0 %v3145_v19  ;;  %2568 = vmatprep.subr.msk.mxu1 %vm157_vm0, %v3089_v10 }
  0x31   :  { %2542 = vmatpush3.msra.mxu0 %v3153_v20 }
  0x32   :  { %2543 = vmatprep.subr.mxu0 %v3161_v21 }
  0x33   :  { %2544 = vmatpush3.msra.mxu0 %v3167_v22  ;;  %2569 = vmatpush3.xpose.msk.msra.mxu1 %vm157_vm0, %v3095_v11 }
  0x34   :  { %2545 = vmatprep.subr.mxu0 %v3173_v23  ;;  %2570 = vmatprep.subr.msk.mxu1 %vm157_vm0, %v3100_v12 }
  0x35   :  { %2546 = vmatpush3.msra.mxu0 %v3181_v24 }
  0x36   :  { %2547 = vmatprep.subr.mxu0 %v3189_v25 }
  0x37   :  { %2548 = vmatpush3.msra.mxu0 %v3195_v26  ;;  %2571 = vmatpush3.xpose.msk.msra.mxu1 %vm157_vm0, %v3106_v13 }
  0x38   :  { %2549 = vmatprep.subr.mxu0 %v3201_v27  ;;  %2572 = vmatprep.subr.msk.mxu1 %vm157_vm0, %v3111_v14 }
  0x39   :  { %2550 = vmatpush3.msra.mxu0 %v3209_v28 }
  0x3a   :  { %2551 = vmatprep.subr.mxu0 %v3217_v29 }
  0x3b   :  { %2552 = vmatpush3.msra.mxu0 %v3223_v30  ;;  %2573 = vmatpush3.xpose.msk.msra.mxu1 %vm157_vm0, %v3124_v16 }
  0x3c   :  { %2553 = vmatprep.subr.mxu0 %v3229_v31  ;;  %2574 = vmatprep.subr.msk.mxu1 %vm157_vm0, %v3131_v17 }
  0x3d   :  { %2554 = vmatpush3.msra.mxu0 %v3237_v32 }
  0x3e   :  { %152 = vmatmul.mubr.f32.vlgmr.msra.gmra.mxu0 %v3245_v33  ;;  %2592 = vmatprep.subr.mxu0 %v3021_v0 }
  0x3f   :  { %2575 = vmatpush3.xpose.msk.msra.mxu1 %vm157_vm0, %v3139_v18  ;;  %2593 = vmatpush3.msra.mxu0 %v3026_v1 }
  0x40   :  { %2576 = vmatprep.subr.msk.mxu1 %vm157_vm0, %v3145_v19  ;;  %2594 = vmatprep.subr.mxu0 %v3031_v2 }
  0x41   :  { %2595 = vmatpush3.msra.mxu0 %v3037_v3 }
  0x42   :  { %2596 = vmatprep.subr.mxu0 %v3045_v4 }
  0x43   :  { %2577 = vmatpush3.xpose.msk.msra.mxu1 %vm157_vm0, %v3153_v20  ;;  %2597 = vmatpush3.msra.mxu0 %v3053_v5 }
  0x44   :  { %2578 = vmatprep.subr.msk.mxu1 %vm157_vm0, %v3161_v21  ;;  %2598 = vmatprep.subr.mxu0 %v3061_v6 }
  0x45   :  { %2599 = vmatpush3.msra.mxu0 %v3067_v7 }
  0x46   :  { %2600 = vmatprep.subr.mxu0 %v3073_v8 }
  0x47   :  { %2579 = vmatpush3.xpose.msk.msra.mxu1 %vm157_vm0, %v3167_v22  ;;  %2601 = vmatpush3.msra.mxu0 %v3081_v9 }
  0x48   :  { %2580 = vmatprep.subr.msk.mxu1 %vm157_vm0, %v3173_v23  ;;  %2602 = vmatprep.subr.mxu0 %v3089_v10 }
  0x49   :  { %2603 = vmatpush3.msra.mxu0 %v3095_v11 }
  0x4a   :  { %2604 = vmatprep.subr.mxu0 %v3100_v12 }
  0x4b   :  { %2581 = vmatpush3.xpose.msk.msra.mxu1 %vm157_vm0, %v3181_v24  ;;  %2605 = vmatpush3.msra.mxu0 %v3106_v13 }
  0x4c   :  { %2582 = vmatprep.subr.msk.mxu1 %vm157_vm0, %v3189_v25  ;;  %2606 = vmatprep.subr.mxu0 %v3111_v14 }
  0x4d   :  { %2607 = vmatpush3.msra.mxu0 %v3124_v16 }
  0x4e   :  { %2608 = vmatprep.subr.mxu0 %v3131_v17 }
  0x4f   :  { %2583 = vmatpush3.xpose.msk.msra.mxu1 %vm157_vm0, %v3195_v26  ;;  %2609 = vmatpush3.msra.mxu0 %v3139_v18 }
  0x50   :  { %2584 = vmatprep.subr.msk.mxu1 %vm157_vm0, %v3201_v27  ;;  %2610 = vmatprep.subr.mxu0 %v3145_v19 }
  0x51   :  { %2611 = vmatpush3.msra.mxu0 %v3153_v20 }
  0x52   :  { %2612 = vmatprep.subr.mxu0 %v3161_v21 }
  0x53   :  { %2585 = vmatpush3.xpose.msk.msra.mxu1 %vm157_vm0, %v3209_v28  ;;  %2613 = vmatpush3.msra.mxu0 %v3167_v22 }
  0x54   :  { %2586 = vmatprep.subr.msk.mxu1 %vm157_vm0, %v3217_v29  ;;  %2614 = vmatprep.subr.mxu0 %v3173_v23 }
  0x55   :  { %2615 = vmatpush3.msra.mxu0 %v3181_v24 }
  0x56   :  { %2616 = vmatprep.subr.mxu0 %v3189_v25 }
  0x57   :  { %2587 = vmatpush3.xpose.msk.msra.mxu1 %vm157_vm0, %v3223_v30  ;;  %2617 = vmatpush3.msra.mxu0 %v3195_v26 }
  0x58   :  { %2588 = vmatprep.subr.msk.mxu1 %vm157_vm0, %v3229_v31  ;;  %2618 = vmatprep.subr.mxu0 %v3201_v27 }
  0x59   :  { %2619 = vmatpush3.msra.mxu0 %v3209_v28 }
  0x5a   :  { %2620 = vmatprep.subr.mxu0 %v3217_v29 }
  0x5b   :  { %2589 = vmatpush3.xpose.msk.msra.mxu1 %vm157_vm0, %v3237_v32  ;;  %2621 = vmatpush3.msra.mxu0 %v3223_v30 }
  0x5c   :  { %2622 = vmatprep.subr.mxu0 %v3229_v31 }
  0x5d   :  { %2623 = vmatpush3.msra.mxu0 %v3237_v32 }
  0x5e   :  { %2627 = vmatprep.subr.msk.mxu0 %vm157_vm0, %v3021_v0  ;;  %v506_v0 = vrot.slane %v482_v59, %v3395_v56 }
  0xfe   :  { %v2555_v34 = vpop.f32.mrf.mxu0 }
 0x100   :  { %v2556_v35 = vpop.f32.mrf.mxu0 }
 0x101   :  { %v2557_v36 = vadd.f32 %v2556_v35, %v2555_v34 }
 0x103   :  { %2590 = vmatprep.mubr.msk.f32.mxu1 %vm157_vm0, %v2557_v36 }
 0x104   :  { %2591 = vmatmul.mubr.msk.f32.vlgmr.msra.gmra.mxu1 %vm157_vm0, %v2557_v36 }
 0x1c4   :  { %v323_v37 = vpop.f32.mrf.mxu1 }
 0x1c5   :  { %v328_v38 = vmul.f32 0.03125, %v323_v37 }
 0x1c6   :  { %v325_v39 = vpop.f32.mrf.mxu1 }
 0x1c7   :  { %v329_v40 = vmul.f32 0.03125, %v325_v39  ;;  %v330_v41 = vsub.f32 %v3245_v33, %v328_v38 }
 0x1c9   :  { %v3324_v42 = vsub.f32 %v3116_v15, %v329_v40  ;;  %v332_v44 = vmul.f32 %v330_v41, %v330_v41 }
 0x1cb   :  { %v333_v43 = vmul.f32 %v3324_v42, %v3324_v42 }
 0x1cd   :  { %398 = vmatprep.mubr.f32.mxu0 %v333_v43 }
 0x1ce   :  { %399 = vmatmul.mubr.f32.vlgmr.msra.gmra.mxu0 %v332_v44 }
 0x1cf   :  { %2628 = vmatpush3.xpose.msk.msra.mxu0 %vm157_vm0, %v3026_v1  ;;  %v497_v1 = vrot.slane %v480_v57, %v3398_v58 }
 0x1d0   :  { %2629 = vmatprep.subr.msk.mxu0 %vm157_vm0, %v3031_v2 }
 0x1d3   :  { %2630 = vmatpush3.xpose.msk.msra.mxu0 %vm157_vm0, %v3037_v3 }
 0x1d4   :  { %2631 = vmatprep.subr.msk.mxu0 %vm157_vm0, %v3045_v4 }
 0x1d7   :  { %2632 = vmatpush3.xpose.msk.msra.mxu0 %vm157_vm0, %v3053_v5  ;;  %v510_v5 = vrot.slane %v482_v59, %v3398_v58 }
 0x1d8   :  { %2633 = vmatprep.subr.msk.mxu0 %vm157_vm0, %v3061_v6 }
 0x1db   :  { %2634 = vmatpush3.xpose.msk.msra.mxu0 %vm157_vm0, %v3067_v7 }
 0x1dc   :  { %2635 = vmatprep.subr.msk.mxu0 %vm157_vm0, %v3073_v8 }
 0x1df   :  { %2636 = vmatpush3.xpose.msk.msra.mxu0 %vm157_vm0, %v3081_v9 }
 0x1e0   :  { %2637 = vmatprep.subr.msk.mxu0 %vm157_vm0, %v3089_v10 }
 0x1e3   :  { %2638 = vmatpush3.xpose.msk.msra.mxu0 %vm157_vm0, %v3095_v11 }
 0x1e4   :  { %2639 = vmatprep.subr.msk.mxu0 %vm157_vm0, %v3100_v12 }
 0x1e7   :  { %2640 = vmatpush3.xpose.msk.msra.mxu0 %vm157_vm0, %v3106_v13 }
 0x1e8   :  { %2641 = vmatprep.subr.msk.mxu0 %vm157_vm0, %v3111_v14 }
 0x1eb   :  { %2642 = vmatpush3.xpose.msk.msra.mxu0 %vm157_vm0, %v3124_v16 }
 0x1ec   :  { %2643 = vmatprep.subr.msk.mxu0 %vm157_vm0, %v3131_v17 }
 0x1ef   :  { %2644 = vmatpush3.xpose.msk.msra.mxu0 %vm157_vm0, %v3139_v18 }
 0x1f0   :  { %2645 = vmatprep.subr.msk.mxu0 %vm157_vm0, %v3145_v19 }
 0x1f3   :  { %2646 = vmatpush3.xpose.msk.msra.mxu0 %vm157_vm0, %v3153_v20 }
 0x1f4   :  { %2647 = vmatprep.subr.msk.mxu0 %vm157_vm0, %v3161_v21 }
 0x1f7   :  { %2648 = vmatpush3.xpose.msk.msra.mxu0 %vm157_vm0, %v3167_v22 }
 0x1f8   :  { %2649 = vmatprep.subr.msk.mxu0 %vm157_vm0, %v3173_v23  ;;  %v2970_v23 = vmov 0.0  }
 0x1f9   :  { %860 = vmatprep.mubr.f32.mxu1 %v2970_v23 }
 0x1fb   :  { %2650 = vmatpush3.xpose.msk.msra.mxu0 %vm157_vm0, %v3181_v24 }
 0x1fc   :  { %2651 = vmatprep.subr.msk.mxu0 %vm157_vm0, %v3189_v25 }
 0x1ff   :  { %2652 = vmatpush3.xpose.msk.msra.mxu0 %vm157_vm0, %v3195_v26 }
 0x200   :  { %2653 = vmatprep.subr.msk.mxu0 %vm157_vm0, %v3201_v27 }
 0x203   :  { %2654 = vmatpush3.xpose.msk.msra.mxu0 %vm157_vm0, %v3209_v28 }
 0x204   :  { %2655 = vmatprep.subr.msk.mxu0 %vm157_vm0, %v3217_v29 }
 0x207   :  { %2656 = vmatpush3.xpose.msk.msra.mxu0 %vm157_vm0, %v3223_v30 }
 0x208   :  { %2657 = vmatprep.subr.msk.mxu0 %vm157_vm0, %v3229_v31 }
 0x20b   :  { %2658 = vmatpush3.xpose.msk.msra.mxu0 %vm157_vm0, %v3237_v32 }
 0x28e   :  { %v2624_v45 = vpop.f32.mrf.mxu0 }
 0x290   :  { %v2625_v46 = vpop.f32.mrf.mxu0 }
 0x291   :  { %v2626_v47 = vadd.f32 %v2625_v46, %v2624_v45 }
 0x293   :  { %2659 = vmatprep.mubr.msk.f32.mxu0 %vm157_vm0, %v2626_v47 }
 0x294   :  { %2660 = vmatmul.mubr.msk.f32.vlgmr.msra.gmra.mxu0 %vm157_vm0, %v2626_v47  ;;  %vm597_vm0 = vcmask 523264  }
 0x354   :  { %v473_v48 = vpop.f32.mrf.mxu0 }
 0x355   :  { %v478_v49 = vmul.f32 0.03125, %v473_v48 }
 0x356   :  { %v475_v50 = vpop.f32.mrf.mxu0 }
 0x357   :  { %v483_v51 = vadd.f32 1e-05, %v478_v49  ;;  %v479_v52 = vmul.f32 0.03125, %v475_v50 }
 0x359   :  { %2839 = vrsqrt.f32 %v483_v51  ;;  %v484_v54 = vadd.f32 1e-05, %v479_v52 }
 0x35b   :  { %2841 = vrsqrt.f32 %v484_v54 }
 0x366   :  { %v2840_v62 = vpop.eup %2839 }
 0x367   :  { %v487_v63 = vmul.f32 %v2840_v62, %v330_v41 }
 0x368   :  { %v2842_v2 = vpop.eup %2841 }
 0x369   :  { %v500_v3 = vmul.f32 %v493_v61, %v487_v63  ;;  %v488_v4 = vmul.f32 %v2842_v2, %v3324_v42 }
 0x36b   :  { %v513_v6 = vadd.f32 %v506_v0, %v500_v3  ;;  %v501_v7 = vmul.f32 %v497_v1, %v488_v4 }
 0x36d   :  { %515 = vst [vmem:[#allocation2] sm:$0x7] %v513_v6  ;;  %v3405_v8 = vadd.f32 %v510_v5, %v501_v7  ;;  %617 = vrot.lane.b32.xlu1 %v513_v6, %s2956_s0  ;;  %v575_v9 = vrot.slane %v513_v6, 1  ;;  %v604_v10 = vrot.slane %v513_v6, 3  ;;  %v591_v11 = vrot.slane %v513_v6, 6  ;;  %v747_v7 = vld [vmem:[#allocation3 + $0x18] sm:$0xff] }
 0x36e   :  { %v562_v12 = vrot.slane %v513_v6, 4  ;;  %v533_v13 = vrot.slane %v513_v6, 2  ;;  %v549_v14 = vrot.slane %v513_v6, 7  ;;  %v520_v15 = vrot.slane %v513_v6, 5 }
 0x36f   :  { %619 = vrot.lane.b32.xlu0 %v3405_v8, %s2956_s0  ;;  %517 = vst.msk [vmem:[#allocation2 + $0x8] sm:$0x7] %vm516_vm2, %v3405_v8  ;;  %v576_v16 = vrot.slane %v3405_v8, 1  ;;  %v605_v17 = vrot.slane %v3405_v8, 3  ;;  %v592_v18 = vrot.slane %v3405_v8, 6  ;;  %v534_v19 = vrot.slane %v3405_v8, 2 }
 0x370   :  { %v550_v20 = vrot.slane %v3405_v8, 7  ;;  %v563_v21 = vrot.slane %v3405_v8, 4  ;;  %v521_v22 = vrot.slane %v3405_v8, 5 }
 0x371   :  { %706 = vrot.lane.b32.xlu1 %v575_v9, %s2957_s1 }
 0x373   :  { %729 = vrot.lane.b32.xlu0 %v604_v10, %s2958_s25 }
 0x375   :  { %717 = vrot.lane.b32.xlu1 %v591_v11, %s2959_s26 }
 0x377   :  { %593 = vrot.lane.b32.xlu0 %v591_v11, %s2960_s27 }
 0x379   :  { %577 = vrot.lane.b32.xlu1 %v575_v9, %s2961_s28 }
 0x37b   :  { %690 = vrot.lane.b32.xlu0 %v562_v12, %s2962_s29 }
 0x37d   :  { %606 = vrot.lane.b32.xlu1 %v604_v10, %s2963_s30 }
 0x37f   :  { %535 = vrot.lane.b32.xlu0 %v533_v13, %s2957_s1 }
 0x381   :  { %551 = vrot.lane.b32.xlu1 %v549_v14, %s2964_s7 }
 0x383   :  { %564 = vrot.lane.b32.xlu0 %v562_v12, %s2965_s8 }
 0x385   :  { %650 = vrot.lane.b32.xlu1 %v520_v15, %s2966_s9 }
 0x387   :  { %666 = vrot.lane.b32.xlu0 %v533_v13, %s2967_s10 }
 0x389   :  { %678 = vrot.lane.b32.xlu1 %v549_v14, %s2968_s2  ;;  %v770_v14 = vrot.slane %v747_v7, 2 }
 0x38b   :  { %579 = vrot.lane.b32.xlu0 %v576_v16, %s2961_s28 }
 0x38d   :  { %522 = vrot.lane.b32.xlu1 %v520_v15, %s2969_s11 }
 0x38f   :  { %608 = vrot.lane.b32.xlu0 %v605_v17, %s2963_s30 }
 0x391   :  { %731 = vrot.lane.b32.xlu1 %v605_v17, %s2958_s25 }
 0x393   :  { %708 = vrot.lane.b32.xlu0 %v576_v16, %s2957_s1  ;;  %v748_v16 = vld [vmem:[#allocation3 + $0x30] sm:$0xff] }
 0x395   :  { %595 = vrot.lane.b32.xlu1 %v592_v18, %s2960_s27 }
 0x397   :  { %719 = vrot.lane.b32.xlu0 %v592_v18, %s2959_s26 }
 0x399   :  { %537 = vrot.lane.b32.xlu1 %v534_v19, %s2957_s1 }
 0x39b   :  { %553 = vrot.lane.b32.xlu0 %v550_v20, %s2964_s7 }
 0x39d   :  { %566 = vrot.lane.b32.xlu1 %v563_v21, %s2965_s8 }
 0x39f   :  { %524 = vrot.lane.b32.xlu0 %v521_v22, %s2969_s11 }
 0x3a1   :  { %638 = vrot.lane.b32.xlu1 %v513_v6, %s2971_s12  ;;  %v746_v6 = vld [vmem:[#allocation3] sm:$0xfc] }
 0x3a2   :  { %v769_v13 = vrot.slane %v746_v6, 2 }
 0x3a3   :  { %627 = vrot.lane.b32.xlu0 %v604_v10, %s2956_s0 }
 0x3a5   :  { %652 = vrot.lane.b32.xlu1 %v521_v22, %s2966_s9  ;;  %v772_v22 = vrot.slane %v748_v16, 2 }
 0x3a7   :  { %692 = vrot.lane.b32.xlu0 %v563_v21, %s2962_s29 }
 0x3a9   :  { %680 = vrot.lane.b32.xlu1 %v550_v20, %s2968_s2 }
 0x3ab   :  { %668 = vrot.lane.b32.xlu0 %v534_v19, %s2967_s10 }
 0x3ad   :  { %640 = vrot.lane.b32.xlu1 %v3405_v8, %s2971_s12 }
 0x3af   :  { %629 = vrot.lane.b32.xlu0 %v605_v17, %s2956_s0 }
 0x3df   :  { %v618_v24 = vpop.permute.xlu1 %617 }
 0x3e1   :  { %v620_v25 = vpop.permute.xlu0 %619 }
 0x3e2   :  { %v622_v26 = vsel %vm621_vm3, %v618_v24, %v620_v25  ;;  %626 = vst.msk [vmem:[#allocation2 + $0x50] sm:$0x7] %vm516_vm2, %v620_v25  ;;  %vm713_vm2 = vcmask 1044978  }
 0x3e3   :  { %625 = vst [vmem:[#allocation2 + $0x48] sm:$0x7] %v622_v26  ;;  %v707_v27 = vpop.permute.xlu1 %706  ;;  %v749_v26 = vld [vmem:[#allocation3 + $0x48] sm:$0xff] }
 0x3e5   :  { %v730_v28 = vpop.permute.xlu0 %729 }
 0x3e7   :  { %v718_v29 = vpop.permute.xlu1 %717 }
 0x3e9   :  { %v594_v30 = vpop.permute.xlu0 %593 }
 0x3ea   :  { %v760_v60 = vld [vmem:[#allocation2 + $0x48] sm:$0xf] }
 0x3eb   :  { %v578_v31 = vpop.permute.xlu1 %577 }
 0x3ed   :  { %v3441_v32 = vpop.permute.xlu0 %690 }
 0x3ef   :  { %v607_v33 = vpop.permute.xlu1 %606 }
 0x3f1   :  { %v536_v34 = vpop.permute.xlu0 %535 }
 0x3f3   :  { %v3443_v35 = vpop.permute.xlu1 %551 }
 0x3f5   :  { %v3445_v36 = vpop.permute.xlu0 %564 }
 0x3f7   :  { %v3447_v37 = vpop.permute.xlu1 %650 }
 0x3f9   :  { %v3449_v38 = vpop.permute.xlu0 %666 }
 0x3fb   :  { %v3451_v39 = vpop.permute.xlu1 %678 }
 0x3fd   :  { %v580_v40 = vpop.permute.xlu0 %579 }
 0x3fe   :  { %v582_v41 = vsel %vm581_vm4, %v578_v31, %v580_v40  ;;  %587 = vst.msk [vmem:[#allocation2 + $0x20] sm:$0x80] %vm586_vm5, %v580_v40  ;;  %vm721_vm4 = vcmask 1022976   ;;  %vm727_vm5 = vcmask 1014789  }
 0x3ff   :  { %590 = vst.msk [vmem:[#allocation2 + $0x38] sm:$0x3] %vm589_vm6, %v580_v40  ;;  %585 = vst [vmem:[#allocation2 + $0x30] ss:$-20 sps:$4 sm:$0x83] %v582_v41   ;;  %v3455_v42 = vpop.permute.xlu1 %522  ;;  %vm725_vm6 = vcmask 1048053  }
 0x400   :  { %699 = vst.msk [vmem:[#allocation2 + $0x20] sm:$0x80] %vm698_vm7, %v3441_v32  ;;  %vm544_vm7 = vcmask 506886   ;;  %v1079_v41 = vld [vmem:[#allocation3 + $0x68] sm:$0xc] }
 0x401   :  { %703 = vst.msk [vmem:[#allocation2 + $0x38] sm:$0x3] %vm702_vm8, %v3441_v32  ;;  %v609_v43 = vpop.permute.xlu0 %608  ;;  %vm547_vm8 = vcmask 499712  }
 0x402   :  { %v611_v44 = vsel %vm610_vm9, %v607_v33, %v609_v43  ;;  %616 = vst.msk [vmem:[#allocation2 + $0x38] sm:$0xe0] %vm615_vm10, %v609_v43  ;;  %vm658_vm9 = vcmask 1048054   ;;  %vm662_vm10 = vcmask 1040880  }
 0x403   :  { %614 = vst [vmem:[#allocation2 + $0x30] sm:$0xe0] %v611_v44  ;;  %v732_v45 = vpop.permute.xlu1 %731 }
 0x404   :  { %v734_v46 = vsel %vm3775_vm12, %v730_v28, %v732_v45  ;;  %738 = vst.msk [vmem:[#allocation2 + $0x58] sm:$0x7] %vm3776_vm11, %v732_v45  ;;  %vm555_vm12 = vcmask 785408   ;;  %vm560_vm11 = vcmask 502785  }
 0x405   :  { %737 = vst.msk [vmem:[#allocation2 + $0x50] sm:$0x7] %vm634_vm13, %v734_v46  ;;  %v709_v47 = vpop.permute.xlu0 %708 }
 0x406   :  { %716 = vst.msk [vmem:[#allocation2 + $0x40] sm:$0x1c] %vm715_vm14, %v709_v47  ;;  %v710_v49 = vsel %vm539_vm15, %v707_v27, %v709_v47  ;;  %vm786_vm14 = vcmask 1043456  }
 0x407   :  { %v596_v48 = vpop.permute.xlu1 %595 }
 0x408   :  { %v598_v50 = vsel %vm597_vm0, %v594_v30, %v596_v48  ;;  %603 = vst.msk [vmem:[#allocation2 + $0x38] sm:$0x1c] %vm602_vm1, %v596_v48  ;;  %vm674_vm1 = vcmask 1043953  }
 0x409   :  { %601 = vst [vmem:[#allocation2 + $0x30] sm:$0x1c] %v598_v50  ;;  %714 = vst.msk [vmem:[#allocation2 + $0x38] sm:$0x1c] %vm713_vm2, %v710_v49  ;;  %v720_v51 = vpop.permute.xlu0 %719  ;;  %vm568_vm2 = vcmask 777216  }
 0x40a   :  { %v722_v52 = vsel %vm721_vm4, %v718_v29, %v720_v51  ;;  %728 = vst.msk [vmem:[#allocation2 + $0x40] sm:$0xe0] %vm727_vm5, %v720_v51  ;;  %vm573_vm4 = vcmask 505860   ;;  %vm526_vm5 = vcmask 1039360  }
 0x40b   :  { %726 = vst.msk [vmem:[#allocation2 + $0x38] sm:$0xe0] %vm725_vm6, %v722_v52  ;;  %v538_v53 = vpop.permute.xlu1 %537  ;;  %vm531_vm6 = vcmask 504835   ;;  %v762_v28 = vld [vmem:[#allocation2 + $0x58] sm:$0xf] }
 0x40c   :  { %v540_v54 = vsel %vm539_vm15, %v536_v34, %v538_v53  ;;  %545 = vst.msk [vmem:[#allocation2 + $0x8] sm:$0xc0] %vm544_vm7, %v538_v53  ;;  %v761_v57 = vld [vmem:[#allocation2 + $0x50] sm:$0xf]  ;;  %vm686_vm15 = vcmask 1047028   ;;  %vm646_vm7 = vcmask 1046003  }
 0x40d   :  { %548 = vst.msk [vmem:[#allocation2 + $0x20] sm:$0x1] %vm547_vm8, %v538_v53  ;;  %543 = vst [vmem:[#allocation2 + $0x18] ss:$-20 sps:$4 sm:$0xc1] %v540_v54   ;;  %2405 = vmatprep.subr.msk.mxu1 %vm786_vm14, %v761_v57  ;;  %v554_v59 = vpop.permute.xlu0 %553  ;;  %vm664_vm8 = vcmask 1007616  }
 0x40e   :  { %659 = vst.msk [vmem:[#allocation2 + $0x8] sm:$0xc0] %vm658_vm9, %v3447_v37  ;;  %v556_v61 = vsel %vm555_vm12, %v3443_v35, %v554_v59  ;;  %2406 = vmatpush1.msk.msra.mxu1 %vm786_vm14, %v760_v60  ;;  %vm660_vm12 = vcmask 1014790   ;;  %vm694_vm9 = vcmask 228352   ;;  %v750_v35 = vld [vmem:[#allocation3 + $0x60] sm:$0x3] }
 0x40f   :  { %663 = vst.msk [vmem:[#allocation2 + $0x20] sm:$0x1] %vm662_vm10, %v3447_v37  ;;  %559 = vst [vmem:[#allocation2 + $0x18] sm:$0xe] %v556_v61  ;;  %v567_v62 = vpop.permute.xlu1 %566  ;;  %vm700_vm10 = vcmask 1014791  }
 0x410   :  { %561 = vst.msk [vmem:[#allocation2 + $0x20] sm:$0xe] %vm560_vm11, %v554_v59  ;;  %v569_v63 = vsel %vm568_vm2, %v3445_v36, %v567_v62  ;;  %v757_v4 = vld [vmem:[#allocation2 + $0x30] sm:$0xff]  ;;  %vm654_vm11 = vcmask 490496   ;;  %vm682_vm2 = vcmask 236544  }
 0x411   :  { %675 = vst.msk [vmem:[#allocation2 + $0x20] sm:$0xe] %vm674_vm1, %v3449_v38  ;;  %572 = vst [vmem:[#allocation2 + $0x18] sm:$0x70] %v569_v63  ;;  %v525_v0 = vpop.permute.xlu0 %524  ;;  %vm704_vm1 = vcmask 1008640  }
 0x412   :  { %574 = vst.msk [vmem:[#allocation2 + $0x20] sm:$0x70] %vm573_vm4, %v567_v62  ;;  %v527_v1 = vsel %vm526_vm5, %v3455_v42, %v525_v0  ;;  %v758_v2 = vld [vmem:[#allocation2 + $0x38] sm:$0xff]  ;;  %vm768_vm4 = vcmask 1045504   ;;  %vm676_vm5 = vcmask 1010689   ;;  %v1085_v42 = vrot.slane %v1079_v41, 2 }
 0x413   :  { %687 = vst.msk [vmem:[#allocation2 + $0x20] sm:$0x70] %vm686_vm15, %v3451_v39  ;;  %530 = vst [vmem:[#allocation2] sm:$0x38] %v527_v1  ;;  %822 = vmatprep.subr.mxu1 %v758_v2  ;;  %v639_v3 = vpop.permute.xlu1 %638  ;;  %vm670_vm15 = vcmask 244736   ;;  %v771_v21 = vsel %vm768_vm4, %v769_v13, %v770_v14  ;;  %v773_v31 = vsel %vm768_vm4, %v770_v14, %v772_v22 }
 0x414   :  { %532 = vst.msk [vmem:[#allocation2 + $0x8] sm:$0x38] %vm531_vm6, %v525_v0  ;;  %823 = vmatpush1.msra.mxu1 %v757_v4  ;;  %vm642_vm6 = vcmask 498688  }
 0x415   :  { %647 = vst.msk [vmem:[#allocation2 + $0x8] sm:$0x38] %vm646_vm7, %v639_v3  ;;  %v628_v5 = vpop.permute.xlu0 %627  ;;  %vm648_vm7 = vcmask 1012739  }
 0x416   :  { %635 = vst.msk [vmem:[#allocation2 + $0x8] sm:$0x7] %vm634_vm13, %v628_v5  ;;  %vm688_vm13 = vcmask 1013764  }
 0x417   :  { %v653_v8 = vpop.permute.xlu1 %652 }
 0x418   :  { %v655_v9 = vsel %vm654_vm11, %v3447_v37, %v653_v8  ;;  %v754_v11 = vld [vmem:[#allocation2 + $0x18] sm:$0xff]  ;;  %vm3777_vm11 = vcmask 1009664   ;;  %v776_v37 = vrot.slane %v750_v35, 2 }
 0x419   :  { %661 = vst.msk [vmem:[#allocation2 + $0x10] sm:$0xc0] %vm660_vm12, %v655_v9  ;;  %v693_v12 = vpop.permute.xlu0 %692 }
 0x41a   :  { %v755_v10 = vld [vmem:[#allocation2 + $0x20] sm:$0xff]  ;;  %665 = vst.msk [vmem:[#allocation2 + $0x28] sm:$0x1] %vm664_vm8, %v655_v9  ;;  %v695_v15 = vsel %vm694_vm9, %v3441_v32, %v693_v12  ;;  %v774_v32 = vrot.slane %v749_v26, 2 }
 0x41b   :  { %824 = vmatprep.subr.mxu1 %v755_v10  ;;  %701 = vst.msk [vmem:[#allocation2 + $0x28] sm:$0x80] %vm700_vm10, %v695_v15  ;;  %v681_v17 = vpop.permute.xlu1 %680  ;;  %v751_v25 = vld [vmem:[#allocation2] sm:$0xff] }
 0x41c   :  { %825 = vmatpush1.msra.mxu1 %v754_v11  ;;  %705 = vst.msk [vmem:[#allocation2 + $0x40] sm:$0x3] %vm704_vm1, %v695_v15  ;;  %v683_v18 = vsel %vm682_vm2, %v3451_v39, %v681_v17  ;;  %v775_v36 = vsel %vm768_vm4, %v772_v22, %v774_v32  ;;  %v777_v39 = vsel %vm768_vm4, %v774_v32, %v776_v37  ;;  %vm1255_vm1 = vcmask 261120  }
 0x41d   :  { %689 = vst.msk [vmem:[#allocation2 + $0x28] sm:$0x70] %vm688_vm13, %v683_v18  ;;  %v669_v19 = vpop.permute.xlu0 %668  ;;  %v752_v20 = vld [vmem:[#allocation2 + $0x8] sm:$0xff]  ;;  %1249 = vrot.lane.b32.xlu0 %v777_v39, %s2972_s13  ;;  %1247 = vrot.lane.b32.xlu1 %v775_v36, %s2972_s13 }
 0x41e   :  { %v671_v24 = vsel %vm670_vm15, %v3449_v38, %v669_v19  ;;  %826 = vmatprep.subr.mxu1 %v752_v20 }
 0x41f   :  { %677 = vst.msk [vmem:[#allocation2 + $0x28] sm:$0xe] %vm676_vm5, %v671_v24  ;;  %v641_v27 = vpop.permute.xlu1 %640  ;;  %827 = vmatpush1.msra.mxu1 %v751_v25 }
 0x420   :  { %v643_v29 = vsel %vm642_vm6, %v639_v3, %v641_v27  ;;  %2407 = vmatmul.mubr.msk.f32.vlgmr.msra.gmra.mxu1 %vm694_vm9, %v771_v21  ;;  %2679 = vmatprep.subr.msk.mxu1 %vm786_vm14, %v762_v28 }
 0x421   :  { %649 = vst.msk [vmem:[#allocation2 + $0x10] sm:$0x38] %vm648_vm7, %v643_v29  ;;  %v630_v30 = vpop.permute.xlu0 %629  ;;  %2680 = vmatpush3.msk.msra.mxu1 %vm786_vm14, %v762_v28  ;;  %866 = vmatprep.mubr.f32.mxu1 %v2970_v23  ;;  %vm2973_vm14 = vmmov 0  }
 0x422   :  { %v631_v33 = vsel %vm621_vm3, %v628_v5, %v630_v30  ;;  %1245 = vrot.lane.b32.xlu0 %v773_v31, %s2972_s13  ;;  %1243 = vrot.lane.b32.xlu1 %v771_v21, %s2972_s13  ;;  %vm3778_vm3 = vcmask 1014784  }
 0x423   :  { %v759_v34 = vld [vmem:[#allocation2 + $0x40] sm:$0xff]  ;;  %637 = vst.msk [vmem:[#allocation2 + $0x10] sm:$0x7] %vm3777_vm11, %v631_v33  ;;  %vm3779_vm12 = vmmov %vm3778_vm3 }
 0x424   :  { %2681 = vmatprep.subr.mxu1 %v759_v34  ;;  %2408 = vmatmul.mubr.msk.f32.gmra.mxu1 %vm694_vm9, %v773_v31  ;;  %vm3780_vm8 = vmmov %vm3778_vm3 }
 0x425   :  { %2682 = vmatpush3.msra.mxu1 %v759_v34  ;;  %872 = vmatprep.mubr.f32.mxu1 %v2970_v23  ;;  %vm3782_vm10 = vmmov %vm3778_vm3 }
 0x426   :  { %v756_v38 = vld [vmem:[#allocation2 + $0x28] sm:$0xff] }
 0x427   :  { %2683 = vmatprep.subr.mxu1 %v756_v38 }
 0x428   :  { %2409 = vmatmul.mubr.msk.f32.gmra.mxu1 %vm694_vm9, %v775_v36 }
 0x429   :  { %2684 = vmatpush3.msra.mxu1 %v756_v38  ;;  %878 = vmatprep.mubr.f32.mxu1 %v2970_v23 }
 0x42a   :  { %v753_v40 = vld [vmem:[#allocation2 + $0x10] sm:$0xff] }
 0x42b   :  { %2685 = vmatprep.subr.mxu1 %v753_v40 }
 0x42c   :  { %2410 = vmatmul.mubr.msk.f32.gmra.mxu1 %vm694_vm9, %v777_v39 }
 0x42d   :  { %2686 = vmatpush3.msra.mxu1 %v753_v40  ;;  %2687 = vmatprep.mubr.msk.f32.mxu1 %vm694_vm9, %v771_v21 }
 0x430   :  { %2688 = vmatmul.mubr.msk.f32.vlgmr.msra.gmra.mxu1 %vm694_vm9, %v773_v31 }
 0x431   :  { %2690 = vmatprep.mubr.msk.f32.mxu1 %vm694_vm9, %v775_v36 }
 0x434   :  { %2691 = vmatmul.mubr.msk.f32.gmra.mxu1 %vm694_vm9, %v777_v39  ;;  %vm3781_vm9 = vmmov %vm3778_vm3 }
 0x435   :  { %1167 = vmatprep.mubr.f32.mxu1 %v1085_v42 }
 0x4e0   :  { %v3497_v43 = vpop.f32.mrf.mxu1 }
 0x4e1   :  { %v970_v54 = vmul.f32 %v3497_v43, %v3497_v43 }
 0x4e2   :  { %v3499_v44 = vpop.f32.mrf.mxu1 }
 0x4e3   :  { %v971_v50 = vmul.f32 %v3499_v44, %v3499_v44  ;;  %v982_v5 = vmul.f32 %v970_v54, %v3497_v43 }
 0x4e4   :  { %v3501_v45 = vpop.f32.mrf.mxu1 }
 0x4e5   :  { %v973_v48 = vmul.f32 %v3501_v45, %v3501_v45  ;;  %v983_v63 = vmul.f32 %v971_v50, %v3499_v44  ;;  %v994_v18 = vmul.f32 0.044715, %v982_v5 }
 0x4e6   :  { %v3503_v46 = vpop.f32.mrf.mxu1 }
 0x4e7   :  { %v974_v47 = vmul.f32 %v3503_v46, %v3503_v46  ;;  %v985_v59 = vmul.f32 %v973_v48, %v3501_v45  ;;  %v995_v12 = vmul.f32 0.044715, %v983_v63  ;;  %v1006_v31 = vadd.f32 %v994_v18, %v3497_v43 }
 0x4e8   :  { %v3509_v49 = vpop.f32.mrf.mxu1 }
 0x4e9   :  { %v986_v51 = vmul.f32 %v974_v47, %v3503_v46  ;;  %v976_v52 = vmul.f32 %v3509_v49, %v3509_v49  ;;  %v997_v8 = vmul.f32 0.044715, %v985_v59  ;;  %v1007_v26 = vadd.f32 %v995_v12, %v3499_v44 }
 0x4ea   :  { %v3516_v53 = vpop.f32.mrf.mxu1  ;;  %v1018_v40 = vmul.f32 0.7978846, %v1006_v31 }
 0x4eb   :  { %v998_v57 = vmul.f32 0.044715, %v986_v51  ;;  %v988_v60 = vmul.f32 %v976_v52, %v3509_v49  ;;  %v977_v61 = vmul.f32 %v3516_v53, %v3516_v53  ;;  %v1009_v21 = vadd.f32 %v997_v8, %v3501_v45 }
 0x4ec   :  { %v3524_v62 = vpop.f32.mrf.mxu1  ;;  %v1019_v37 = vmul.f32 0.7978846, %v1007_v26 }
 0x4ed   :  { %v1010_v0 = vadd.f32 %v998_v57, %v3503_v46  ;;  %v979_v1 = vmul.f32 %v3524_v62, %v3524_v62  ;;  %v1000_v2 = vmul.f32 0.044715, %v988_v60  ;;  %v989_v3 = vmul.f32 %v977_v61, %v3516_v53 }
 0x4ee   :  { %v3531_v4 = vpop.f32.mrf.mxu1  ;;  %v1021_v34 = vmul.f32 0.7978846, %v1009_v21 }
 0x4ef   :  { %v991_v6 = vmul.f32 %v979_v1, %v3524_v62  ;;  %v980_v7 = vmul.f32 %v3531_v4, %v3531_v4  ;;  %v1012_v9 = vadd.f32 %v1000_v2, %v3509_v49  ;;  %v1001_v10 = vmul.f32 0.044715, %v989_v3 }
 0x4f0   :  { %v3538_v11 = vpop.f32.mrf.mxu1  ;;  %v1022_v13 = vmul.f32 0.7978846, %v1010_v0 }
 0x4f1   :  { %v1003_v14 = vmul.f32 0.044715, %v991_v6  ;;  %v992_v15 = vmul.f32 %v980_v7, %v3531_v4  ;;  %v1013_v16 = vadd.f32 %v1001_v10, %v3516_v53  ;;  %v1024_v22 = vmul.f32 0.7978846, %v1012_v9 }
 0x4f2   :  { %v3542_v17 = vpop.f32.mrf.mxu1  ;;  %2843 = vtanh.f32 %v1022_v13  ;;  %v975_v33 = vmul.f32 %v3538_v11, %v3538_v11 }
 0x4f3   :  { %v1015_v19 = vadd.f32 %v1003_v14, %v3524_v62  ;;  %v1004_v20 = vmul.f32 0.044715, %v992_v15  ;;  %v1025_v24 = vmul.f32 0.7978846, %v1013_v16  ;;  %v972_v42 = vmul.f32 %v3542_v17, %v3542_v17 }
 0x4f4   :  { %v3546_v25 = vpop.f32.mrf.mxu1  ;;  %v987_v41 = vmul.f32 %v3538_v11, %v975_v33 }
 0x4f5   :  { %v1027_v27 = vmul.f32 0.7978846, %v1015_v19  ;;  %v1016_v28 = vadd.f32 %v1004_v20, %v3531_v4  ;;  %2845 = vtanh.f32 %v1025_v24  ;;  %v981_v29 = vmul.f32 %v3546_v25, %v3546_v25 }
 0x4f6   :  { %v3552_v30 = vpop.f32.mrf.mxu1  ;;  %v999_v50 = vmul.f32 0.044715, %v987_v41  ;;  %v984_v51 = vmul.f32 %v972_v42, %v3542_v17 }
 0x4f7   :  { %2847 = vtanh.f32 %v1027_v27  ;;  %v1028_v32 = vmul.f32 0.7978846, %v1016_v28  ;;  %v993_v35 = vmul.f32 %v3546_v25, %v981_v29  ;;  %v978_v36 = vmul.f32 %v3552_v30, %v3552_v30 }
 0x4f8   :  { %2849 = vtanh.f32 %v1024_v22  ;;  %v1011_v60 = vadd.f32 %v3538_v11, %v999_v50  ;;  %v996_v63 = vmul.f32 0.044715, %v984_v51 }
 0x4f9   :  { %2851 = vtanh.f32 %v1028_v32  ;;  %v1005_v38 = vmul.f32 0.044715, %v993_v35  ;;  %v990_v39 = vmul.f32 %v978_v36, %v3552_v30 }
 0x4fa   :  { %2853 = vtanh.f32 %v1021_v34  ;;  %v1023_v6 = vmul.f32 0.7978846, %v1011_v60  ;;  %v1008_v10 = vadd.f32 %v996_v63, %v3542_v17  ;;  %v1354_v60 = vld [vmem:[%s3772_s4 + $0xc0] sm:$0xff]  ;;  %v1355_v63 = vld [vmem:[%s3772_s4 + $0xc8] sm:$0xff] }
 0x4fb   :  { %v1017_v47 = vadd.f32 %v3546_v25, %v1005_v38  ;;  %v1002_v48 = vmul.f32 0.044715, %v990_v39  ;;  %2855 = vtanh.f32 %v1019_v37  ;;  %v1078_v38 = vld [vmem:[#allocation3 + $0x60] sm:$0xc] }
 0x4fc   :  { %2857 = vtanh.f32 %v1018_v40  ;;  %v1020_v22 = vmul.f32 0.7978846, %v1008_v10  ;;  %v1084_v42 = vrot.slane %v1078_v38, 2  ;;  %v1342_v10 = vld [vmem:[%s3772_s4 + $0x60] sm:$0xff]  ;;  %v1357_v38 = vld [vmem:[%s3772_s4 + $0xd8] sm:$0xff] }
 0x4fd   :  { %v1029_v52 = vmul.f32 0.7978846, %v1017_v47  ;;  %v1014_v54 = vadd.f32 %v1002_v48, %v3552_v30 }
 0x4ff   :  { %v2844_v57 = vpop.eup %2843  ;;  %2859 = vtanh.f32 %v1029_v52  ;;  %v1026_v0 = vmul.f32 0.7978846, %v1014_v54  ;;  %v1080_v52 = vld [vmem:[#allocation3 + $0x70] sm:$0xc] }
 0x500   :  { %v1046_v15 = vadd.f32 1.0, %v2844_v57  ;;  %v1086_v57 = vrot.slane %v1080_v52, 2  ;;  %v1340_v52 = vld [vmem:[%s3772_s4 + $0x50] sm:$0xff] }
 0x501   :  { %2861 = vtanh.f32 %v1026_v0 }
 0x502   :  { %v2846_v59 = vpop.eup %2845  ;;  %2863 = vtanh.f32 %v1023_v6  ;;  %v1058_v27 = vmul.f32 0.5, %v1046_v15  ;;  %v1334_v15 = vld [vmem:[%s3772_s4 + $0x20] sm:$0xff] }
 0x503   :  { %v1049_v3 = vadd.f32 1.0, %v2846_v59  ;;  %2865 = vtanh.f32 %v1020_v22  ;;  %v1351_v22 = vld [vmem:[%s3772_s4 + $0xa8] sm:$0xff] }
 0x504   :  { %v2848_v61 = vpop.eup %2847 }
 0x505   :  { %v2850_v1 = vpop.eup %2849  ;;  %v1051_v2 = vadd.f32 1.0, %v2848_v61  ;;  %v1061_v14 = vmul.f32 0.5, %v1049_v3  ;;  %v1358_v61 = vld [vmem:[%s3772_s4 + $0xe0] sm:$0xff] }
 0x506   :  { %v2852_v5 = vpop.eup %2851  ;;  %v1048_v8 = vadd.f32 1.0, %v2850_v1  ;;  %v2446_v0 = vcombine.low %v1354_v60, %v1358_v61  ;;  %v2447_v1 = vcombine.high %v1354_v60, %v1358_v61  ;;  %v1350_v3 = vld [vmem:[%s3772_s4 + $0xa0] sm:$0xff] }
 0x507   :  { %v1052_v7 = vadd.f32 1.0, %v2852_v5  ;;  %v1063_v9 = vmul.f32 0.5, %v1051_v2  ;;  %v2854_v12 = vpop.eup %2853  ;;  %v1073_v26 = vmul.f32 %v1061_v14, %v3516_v53  ;;  %v1346_v2 = vld [vmem:[%s3772_s4 + $0x80] sm:$0xff] }
 0x508   :  { %v2856_v16 = vpop.eup %2855  ;;  %v1045_v19 = vadd.f32 1.0, %v2854_v12  ;;  %v1060_v20 = vmul.f32 0.5, %v1048_v8  ;;  %1575 = vmatprep.subr.bf16.mxu0 %v2447_v1  ;;  %v2438_v8 = vcombine.low %v1346_v2, %v1350_v3  ;;  %v1330_v14 = vld [vmem:[%s3772_s4] sm:$0xff]  ;;  %v1333_v1 = vld [vmem:[%s3772_s4 + $0x18] sm:$0xff] }
 0x509   :  { %v1064_v13 = vmul.f32 0.5, %v1052_v7  ;;  %v1075_v21 = vmul.f32 %v1063_v9, %v3524_v62  ;;  %v2858_v24 = vpop.eup %2857  ;;  %v1043_v28 = vadd.f32 1.0, %v2856_v16  ;;  %v2439_v7 = vcombine.high %v1346_v2, %v1350_v3  ;;  %1576 = vmatpush1.bf16.msra.mxu0 %v2446_v0  ;;  %v1338_v9 = vld [vmem:[%s3772_s4 + $0x40] sm:$0xff]  ;;  %v1336_v0 = vld [vmem:[%s3772_s4 + $0x30] sm:$0xff] }
 0x50a   :  { %v1042_v29 = vadd.f32 1.0, %v2858_v24  ;;  %v1057_v31 = vmul.f32 0.5, %v1045_v19  ;;  %v1072_v32 = vmul.f32 %v1060_v20, %v3509_v49  ;;  %v2431_v12 = vcombine.high %v1338_v9, %v1342_v10 }
 0x50b   :  { %v1076_v18 = vmul.f32 %v1064_v13, %v3531_v4  ;;  %v1070_v4 = vmul.f32 %v1058_v27, %v3503_v46  ;;  %v1055_v34 = vmul.f32 0.5, %v1043_v28  ;;  %1577 = vmatprep.subr.bf16.mxu0 %v2439_v7  ;;  %v2430_v13 = vcombine.low %v1338_v9, %v1342_v10  ;;  %v2745_v9 = vld [vmem:[#allocation6 + $0xe4] ss:$16 sps:$4 sm:$0xff]   ;;  %v2748_v10 = vld [vmem:[#allocation6 + $0xec] ss:$16 sps:$4 sm:$0xff]  }
 0x50c   :  { %v2860_v33 = vpop.eup %2859  ;;  %v1054_v62 = vmul.f32 0.5, %v1042_v29  ;;  %v1069_v35 = vmul.f32 %v1057_v31, %v3501_v45  ;;  %v2423_v16 = vcombine.high %v1330_v14, %v1334_v15  ;;  %v1339_v29 = vld [vmem:[%s3772_s4 + $0x48] sm:$0xff] }
 0x50d   :  { %1127 = vmatprep.subr.mxu1 %v1076_v18  ;;  %v1053_v36 = vadd.f32 1.0, %v2860_v33  ;;  %v1067_v37 = vmul.f32 %v1055_v34, %v3499_v44  ;;  %1578 = vmatpush1.bf16.msra.mxu0 %v2438_v8  ;;  %v2422_v18 = vcombine.low %v1330_v14, %v1334_v15  ;;  %v1343_v31 = vld [vmem:[%s3772_s4 + $0x68] sm:$0xff]  ;;  %v2754_v15 = vld [vmem:[#allocation6 + $0xcc] ss:$16 sps:$4 sm:$0xff]  }
 0x50e   :  { %1128 = vmatpush1.xpose.msra.mxu1 %v1075_v21  ;;  %v2862_v53 = vpop.eup %2861  ;;  %v1066_v49 = vmul.f32 %v1054_v62, %v3497_v43  ;;  %1579 = vmatprep.subr.bf16.mxu0 %v2431_v12  ;;  %v1347_v21 = vld [vmem:[%s3772_s4 + $0x88] sm:$0xff]  ;;  %v2433_v33 = vcombine.high %v1339_v29, %v1343_v31  ;;  %v2432_v62 = vcombine.low %v1339_v29, %v1343_v31  ;;  %v2772_v31 = vld [vmem:[#allocation6 + $0x6c] ss:$16 sps:$4 sm:$0xff]  }
 0x50f   :  { %1129 = vmatprep.subr.mxu1 %v1073_v26  ;;  %v2864_v39 = vpop.eup %2863  ;;  %v1065_v40 = vmul.f32 0.5, %v1053_v36  ;;  %v1050_v41 = vadd.f32 1.0, %v2862_v53  ;;  %v2441_v27 = vcombine.high %v1347_v21, %v1351_v22  ;;  %v1335_v34 = vld [vmem:[%s3772_s4 + $0x28] sm:$0xff]  ;;  %v1356_v53 = vld [vmem:[%s3772_s4 + $0xd0] sm:$0xff] }
 0x510   :  { %v1047_v46 = vadd.f32 1.0, %v2864_v39  ;;  %v2866_v48 = vpop.eup %2865  ;;  %v2743_v12 = vld [vmem:[#allocation6 + $0xe0] ss:$16 sps:$4 sm:$0xff]   ;;  %v2751_v14 = vld [vmem:[#allocation6 + $0xc4] ss:$16 sps:$4 sm:$0xff]  }
 0x511   :  { %v1077_v47 = vmul.f32 %v3546_v25, %v1065_v40  ;;  %v1062_v45 = vmul.f32 0.5, %v1050_v41  ;;  %v1044_v44 = vadd.f32 1.0, %v2866_v48  ;;  %1580 = vmatpush1.bf16.msra.mxu0 %v2430_v13  ;;  %v1349_v48 = vld [vmem:[%s3772_s4 + $0x98] sm:$0xff]  ;;  %v2746_v13 = vld [vmem:[#allocation6 + $0xe8] ss:$16 sps:$4 sm:$0xff]  }
 0x512   :  { %1130 = vmatpush1.xpose.msra.mxu1 %v1072_v32  ;;  %v1059_v43 = vmul.f32 0.5, %v1047_v46  ;;  %1581 = vmatprep.subr.bf16.mxu0 %v2423_v16  ;;  %v2440_v32 = vcombine.low %v1347_v21, %v1351_v22  ;;  %v2974_v46 = vmov 0   ;;  %v2749_v16 = vld [vmem:[#allocation6 + $0xc0] ss:$16 sps:$4 sm:$0xff]   ;;  %v2758_v22 = vld [vmem:[#allocation6 + $0xa8] ss:$16 sps:$4 sm:$0xff]  }
 0x513   :  { %1131 = vmatprep.subr.mxu1 %v1070_v4  ;;  %v1074_v50 = vmul.f32 %v1062_v45, %v3552_v30  ;;  %v1056_v51 = vmul.f32 0.5, %v1044_v44  ;;  %v1250_v30 = vpop.permute.xlu0 %1249  ;;  %v1331_v4 = vld [vmem:[%s3772_s4 + $0x8] sm:$0xff]  ;;  %1599 = vmatprep.mubr.bf16.mxu0 %v2974_v46  ;;  %v1352_v45 = vld [vmem:[%s3772_s4 + $0xb0] sm:$0xff] }
 0x514   :  { %v1071_v25 = vmul.f32 %v3538_v11, %v1059_v43  ;;  %v1248_v11 = vpop.permute.xlu1 %1247  ;;  %v2424_v36 = vcombine.low %v1331_v4, %v1335_v34  ;;  %v1353_v43 = vld [vmem:[%s3772_s4 + $0xb8] sm:$0xff] }
 0x515   :  { %v1068_v54 = vmul.f32 %v1056_v51, %v3542_v17  ;;  %1582 = vmatpush1.bf16.msra.mxu0 %v2422_v18  ;;  %v2445_v51 = vcombine.high %v1349_v48, %v1353_v43  ;;  %v2752_v18 = vld [vmem:[#allocation6 + $0xc8] ss:$16 sps:$4 sm:$0xff]   ;;  %v2755_v21 = vld [vmem:[#allocation6 + $0xa0] ss:$16 sps:$4 sm:$0xff]   ;;  %v2769_v29 = vld [vmem:[#allocation6 + $0x64] ss:$16 sps:$4 sm:$0xff]  }
 0x516   :  { %1132 = vmatpush1.xpose.msra.mxu1 %v1069_v35  ;;  %v2425_v35 = vcombine.high %v1331_v4, %v1335_v34  ;;  %v2775_v4 = vld [vmem:[#allocation6 + $0x44] ss:$16 sps:$4 sm:$0xff]   ;;  %v2778_v34 = vld [vmem:[#allocation6 + $0x4c] ss:$16 sps:$4 sm:$0xff]  }
 0x517   :  { %1133 = vmatprep.subr.mxu1 %v1067_v37  ;;  %v1246_v59 = vpop.permute.xlu0 %1245  ;;  %v1360_v37 = vld [vmem:[%s3772_s4 + $0xf0] sm:$0xff] }
 0x518   :  { %v1244_v17 = vpop.permute.xlu1 %1243  ;;  %v2451_v39 = vcombine.high %v1356_v53, %v1360_v37  ;;  %v2450_v40 = vcombine.low %v1356_v53, %v1360_v37  ;;  %v2784_v53 = vld [vmem:[#allocation6 + $0x2c] ss:$16 sps:$4 sm:$0xff]   ;;  %v2779_v37 = vld [vmem:[#allocation6 + $0x20] ss:$16 sps:$4 sm:$0xff]  }
 0x51a   :  { %1134 = vmatpush1.xpose.msra.mxu1 %v1066_v49  ;;  %v1361_v49 = vld [vmem:[%s3772_s4 + $0xf8] sm:$0xff]  ;;  %1657 = vmatprep.subr.bf16.mxu0 %v2451_v39 }
 0x51b   :  { %2693 = vmatprep.subr.mxu1 %v2970_v23  ;;  %v2452_v41 = vcombine.low %v1357_v38, %v1361_v49  ;;  %v2787_v39 = vld [vmem:[#allocation6 + $0x4] ss:$16 sps:$4 sm:$0xff]  }
 0x51d   :  { %1168 = vmatmul.mubr.f32.vlgmr.msra.gmra.mxu1 %v1084_v42  ;;  %v2453_v42 = vcombine.high %v1357_v38, %v1361_v49  ;;  %v2782_v38 = vld [vmem:[#allocation6 + $0x28] ss:$16 sps:$4 sm:$0xff]   ;;  %v2790_v49 = vld [vmem:[#allocation6 + $0xc] ss:$16 sps:$4 sm:$0xff]  }
 0x51e   :  { %2694 = vmatpush3.xpose.msk.msra.mxu1 %vm3778_vm3, %v1077_v47  ;;  %2701 = vmatprep.mubr.msk.f32.mxu1 %vm2973_vm14, %v2970_v23  ;;  %v1348_v47 = vld [vmem:[%s3772_s4 + $0x90] sm:$0xff] }
 0x51f   :  { %2695 = vmatprep.subr.mxu1 %v2970_v23 }
 0x522   :  { %2696 = vmatpush3.xpose.msk.msra.mxu1 %vm3779_vm12, %v1074_v50 }
 0x523   :  { %2697 = vmatprep.subr.mxu1 %v2970_v23 }
 0x526   :  { %2698 = vmatpush3.xpose.msk.msra.mxu1 %vm3780_vm8, %v1071_v25  ;;  %v2443_v25 = vcombine.high %v1348_v47, %v1352_v45 }
 0x527   :  { %2699 = vmatprep.subr.mxu1 %v2970_v23 }
 0x52a   :  { %2700 = vmatpush3.xpose.msk.msra.mxu1 %vm3781_vm9, %v1068_v54 }
 0x52b   :  { %2704 = vmatprep.subr.mxu1 %v2970_v23 }
 0x52d   :  { %2702 = vmatmul.mubr.msk.f32.vlgmr.msra.gmra.mxu1 %vm3782_vm10, %v1086_v57  ;;  %v1344_v57 = vld [vmem:[%s3772_s4 + $0x70] sm:$0xff] }
 0x52e   :  { %2712 = vmatprep.mubr.msk.f32.mxu1 %vm2973_vm14, %v2970_v23  ;;  %2705 = vmatpush3.msra.mxu1 %v1250_v30  ;;  %v1341_v30 = vld [vmem:[%s3772_s4 + $0x58] sm:$0xff]  ;;  %v2435_v60 = vcombine.high %v1340_v52, %v1344_v57  ;;  %v2434_v2 = vcombine.low %v1340_v52, %v1344_v57 }
 0x52f   :  { %2706 = vmatprep.subr.mxu1 %v2970_v23  ;;  %v2803_v52 = vld [vmem:[#allocation6 + $0x1a0] ss:$16 sps:$4 sm:$0xff]   ;;  %v2811_v57 = vld [vmem:[#allocation6 + $0x184] ss:$16 sps:$4 sm:$0xff]  }
 0x530   :  { %2707 = vmatpush3.msra.mxu1 %v1248_v11  ;;  %v1345_v11 = vld [vmem:[%s3772_s4 + $0x78] sm:$0xff] }
 0x531   :  { %2708 = vmatprep.subr.mxu1 %v2970_v23  ;;  %v2437_v61 = vcombine.high %v1341_v30, %v1345_v11  ;;  %v2436_v3 = vcombine.low %v1341_v30, %v1345_v11  ;;  %v2814_v30 = vld [vmem:[#allocation6 + $0x18c] ss:$16 sps:$4 sm:$0xff]   ;;  %v2809_v11 = vld [vmem:[#allocation6 + $0x180] ss:$16 sps:$4 sm:$0xff]  }
 0x532   :  { %2709 = vmatpush3.msra.mxu1 %v1246_v59  ;;  %v2442_v59 = vcombine.low %v1348_v47, %v1352_v45  ;;  %v2791_v47 = vld [vmem:[#allocation6 + $0x1e0] ss:$16 sps:$4 sm:$0xff]   ;;  %v2794_v45 = vld [vmem:[#allocation6 + $0x1e8] ss:$16 sps:$4 sm:$0xff]  }
 0x533   :  { %2710 = vmatprep.subr.mxu1 %v2970_v23  ;;  %v1359_v23 = vld [vmem:[%s3772_s4 + $0xe8] sm:$0xff] }
 0x534   :  { %2711 = vmatpush3.msra.mxu1 %v1244_v17  ;;  %v2448_v5 = vcombine.low %v1355_v63, %v1359_v23  ;;  %v2449_v6 = vcombine.high %v1355_v63, %v1359_v23  ;;  %v2444_v17 = vcombine.low %v1349_v48, %v1353_v43  ;;  %v1332_v63 = vld [vmem:[%s3772_s4 + $0x10] sm:$0xff]  ;;  %v1337_v23 = vld [vmem:[%s3772_s4 + $0x38] sm:$0xff] }
 0x535   :  { %v2426_v7 = vcombine.low %v1332_v63, %v1336_v0  ;;  %v2428_v8 = vcombine.low %v1333_v1, %v1337_v23  ;;  %v2799_v48 = vld [vmem:[#allocation6 + $0x1c4] ss:$16 sps:$4 sm:$0xff]   ;;  %v2802_v43 = vld [vmem:[#allocation6 + $0x1cc] ss:$16 sps:$4 sm:$0xff]  }
 0x536   :  { %1616 = vmatprep.subr.bf16.mxu1 %v2449_v6  ;;  %v2429_v6 = vcombine.high %v1333_v1, %v1337_v23  ;;  %v2826_v1 = vld [vmem:[#allocation6 + $0x14c] ss:$16 sps:$4 sm:$0xff]   ;;  %v2821_v23 = vld [vmem:[#allocation6 + $0x140] ss:$16 sps:$4 sm:$0xff]  }
 0x5dd   :  { %v1169_v19 = vpop.f32.mrf.mxu1 }
 0x5df   :  { %v1171_v20 = vpop.f32.mrf.mxu1 }
 0x5e0   :  { %v2760_v20 = vld [vmem:[#allocation6 + $0xac] ss:$16 sps:$4 sm:$0xff]  }
 0x5ed   :  { %v1239_v24 = vpop.f32.mrf.mxu1 }
 0x5ee   :  { %v1240_v26 = vadd.f32 %v1239_v24, %v1169_v19  ;;  %v2757_v19 = vld [vmem:[#allocation6 + $0xa4] ss:$16 sps:$4 sm:$0xff]  }
 0x5ef   :  { %v2703_v28 = vpop.f32.mrf.mxu1  ;;  %v2763_v24 = vld [vmem:[#allocation6 + $0x84] ss:$16 sps:$4 sm:$0xff]  }
 0x5f0   :  { %2713 = vmatmul.mubr.msk.f32.vlgmr.msra.gmra.mxu1 %vm1255_vm1, %v1240_v26  ;;  %v2766_v26 = vld [vmem:[#allocation6 + $0x8c] ss:$16 sps:$4 sm:$0xff]   ;;  %v2764_v28 = vld [vmem:[#allocation6 + $0x88] ss:$16 sps:$4 sm:$0xff]  }
 0x5f1   :  { %1617 = vmatpush1.bf16.msra.mxu1 %v2448_v5  ;;  %1640 = vmatprep.mubr.bf16.mxu1 %v2974_v46  ;;  %v2427_v5 = vcombine.high %v1332_v63, %v1336_v0  ;;  %v2818_v63 = vld [vmem:[#allocation6 + $0x168] ss:$16 sps:$4 sm:$0xff]   ;;  %v2823_v0 = vld [vmem:[#allocation6 + $0x144] ss:$16 sps:$4 sm:$0xff]  }
 0x5f2   :  { %1618 = vmatprep.subr.bf16.mxu1 %v2441_v27  ;;  %v2761_v27 = vld [vmem:[#allocation6 + $0x80] ss:$16 sps:$4 sm:$0xff]  }
 0x5f5   :  { %1619 = vmatpush1.bf16.msra.mxu1 %v2440_v32  ;;  %v2767_v32 = vld [vmem:[#allocation6 + $0x60] ss:$16 sps:$4 sm:$0xff]  }
 0x5f6   :  { %1620 = vmatprep.subr.bf16.mxu1 %v2433_v33  ;;  %v2770_v33 = vld [vmem:[#allocation6 + $0x68] ss:$16 sps:$4 sm:$0xff]  }
 0x5f9   :  { %1621 = vmatpush1.bf16.msra.mxu1 %v2432_v62  ;;  %v2773_v62 = vld [vmem:[#allocation6 + $0x40] ss:$16 sps:$4 sm:$0xff]  }
 0x5fa   :  { %1622 = vmatprep.subr.bf16.mxu1 %v2425_v35  ;;  %v2776_v35 = vld [vmem:[#allocation6 + $0x48] ss:$16 sps:$4 sm:$0xff]  }
 0x5fd   :  { %1623 = vmatpush1.bf16.msra.mxu1 %v2424_v36  ;;  %v2781_v36 = vld [vmem:[#allocation6 + $0x24] ss:$16 sps:$4 sm:$0xff]  }
 0x5fe   :  { %1698 = vmatprep.subr.bf16.mxu1 %v2453_v42  ;;  %v2793_v42 = vld [vmem:[#allocation6 + $0x1e4] ss:$16 sps:$4 sm:$0xff]  }
 0x6b0   :  { %v1325_v44 = vpop.f32.mrf.mxu1 }
 0x6b1   :  { %v1329_v50 = vpack.c.bf16 %v1325_v44, %v1325_v44  ;;  %v2797_v44 = vld [vmem:[#allocation6 + $0x1c0] ss:$16 sps:$4 sm:$0xff]  }
 0x6b2   :  { %v2714_v54 = vpop.f32.mrf.mxu1 }
 0x6b3   :  { %2454 = vmatmul.mubr.msk.bf16.vlgmr.msra.gmra.mxu0 %vm597_vm0, %v1329_v50  ;;  %2455 = vmatmul.mubr.msk.bf16.vlgmr.msra.gmra.mxu1 %vm597_vm0, %v1329_v50  ;;  %v2806_v54 = vld [vmem:[#allocation6 + $0x1a8] ss:$16 sps:$4 sm:$0xff]  }
 0x6b4   :  { %1658 = vmatpush1.bf16.msra.mxu0 %v2450_v40  ;;  %1699 = vmatpush1.bf16.msra.mxu1 %v2452_v41  ;;  %v2785_v40 = vld [vmem:[#allocation6] ss:$16 sps:$4 sm:$0xff]   ;;  %v2788_v41 = vld [vmem:[#allocation6 + $0x8] ss:$16 sps:$4 sm:$0xff]  }
 0x6b5   :  { %1659 = vmatprep.subr.bf16.mxu0 %v2443_v25  ;;  %1700 = vmatprep.subr.bf16.mxu1 %v2445_v51  ;;  %v2805_v25 = vld [vmem:[#allocation6 + $0x1a4] ss:$16 sps:$4 sm:$0xff]   ;;  %v2808_v51 = vld [vmem:[#allocation6 + $0x1ac] ss:$16 sps:$4 sm:$0xff]  }
 0x6b6   :  { %1681 = vmatprep.mubr.bf16.mxu0 %v2974_v46  ;;  %1722 = vmatprep.mubr.bf16.mxu1 %v2974_v46  ;;  %v2796_v46 = vld [vmem:[#allocation6 + $0x1ec] ss:$16 sps:$4 sm:$0xff]  }
 0x6b8   :  { %1660 = vmatpush1.bf16.msra.mxu0 %v2442_v59  ;;  %1701 = vmatpush1.bf16.msra.mxu1 %v2444_v17  ;;  %v2812_v59 = vld [vmem:[#allocation6 + $0x188] ss:$16 sps:$4 sm:$0xff]   ;;  %v2817_v17 = vld [vmem:[#allocation6 + $0x164] ss:$16 sps:$4 sm:$0xff]  }
 0x6b9   :  { %1661 = vmatprep.subr.bf16.mxu0 %v2435_v60  ;;  %1702 = vmatprep.subr.bf16.mxu1 %v2437_v61  ;;  %v2820_v60 = vld [vmem:[#allocation6 + $0x16c] ss:$16 sps:$4 sm:$0xff]   ;;  %v2815_v61 = vld [vmem:[#allocation6 + $0x160] ss:$16 sps:$4 sm:$0xff]  }
 0x6bc   :  { %1662 = vmatpush1.bf16.msra.mxu0 %v2434_v2  ;;  %1703 = vmatpush1.bf16.msra.mxu1 %v2436_v3  ;;  %v2824_v2 = vld [vmem:[#allocation6 + $0x148] ss:$16 sps:$4 sm:$0xff]   ;;  %v2827_v3 = vld [vmem:[#allocation6 + $0x120] ss:$16 sps:$4 sm:$0xff]  }
 0x6bd   :  { %1663 = vmatprep.subr.bf16.mxu0 %v2427_v5  ;;  %1704 = vmatprep.subr.bf16.mxu1 %v2429_v6  ;;  %v2829_v5 = vld [vmem:[#allocation6 + $0x124] ss:$16 sps:$4 sm:$0xff]   ;;  %v2830_v6 = vld [vmem:[#allocation6 + $0x128] ss:$16 sps:$4 sm:$0xff]  }
 0x6c0   :  { %1664 = vmatpush1.bf16.msra.mxu0 %v2426_v7  ;;  %1705 = vmatpush1.bf16.msra.mxu1 %v2428_v8  ;;  %v2832_v7 = vld [vmem:[#allocation6 + $0x12c] ss:$16 sps:$4 sm:$0xff]   ;;  %v2835_v8 = vld [vmem:[#allocation6 + $0x104] ss:$16 sps:$4 sm:$0xff]  }
 0x6c1   :  { %2218 = vmatprep.subr.bf16.mxu0 %v2745_v9  ;;  %2259 = vmatprep.subr.bf16.mxu1 %v2748_v10  ;;  %v2838_v9 = vld [vmem:[#allocation6 + $0x10c] ss:$16 sps:$4 sm:$0xff]   ;;  %v2833_v10 = vld [vmem:[#allocation6 + $0x100] ss:$16 sps:$4 sm:$0xff]  }
 0x6c3   :  { %2456 = vmatmul.mubr.msk.bf16.vlgmr.msra.gmra.mxu0 %vm597_vm0, %v1329_v50  ;;  %2457 = vmatmul.mubr.msk.bf16.vlgmr.msra.gmra.mxu1 %vm597_vm0, %v1329_v50  ;;  %v2800_v50 = vld [vmem:[#allocation6 + $0x1c8] ss:$16 sps:$4 sm:$0xff]  }
 0x6c4   :  { %2219 = vmatpush1.bf16.msra.mxu0 %v2743_v12  ;;  %2260 = vmatpush1.bf16.msra.mxu1 %v2746_v13  ;;  %v2836_v12 = vld [vmem:[#allocation6 + $0x108] ss:$16 sps:$4 sm:$0xff]   ;;  %v1374_v13 = vsub.s32 2, %v3392_v55 }
 0x6c5   :  { %2220 = vmatprep.subr.bf16.mxu0 %v2751_v14  ;;  %2261 = vmatprep.subr.bf16.mxu1 %v2754_v15  ;;  %v1362_v14 = vld [vmem:[%s3771_s3] ss:$2 sm:$0xff]  ;;  %v1378_v15 = vsub.s32 3, %v3392_v55 }
 0x6c8   :  { %2221 = vmatpush1.bf16.msra.mxu0 %v2749_v16  ;;  %2262 = vmatpush1.bf16.msra.mxu1 %v2752_v18  ;;  %v1367_v16 = vrot.slane %v1362_v14, %v3395_v56  ;;  %v1375_v18 = vrot.slane %v1362_v14, %v1374_v13 }
 0x6c9   :  { %2222 = vmatprep.subr.bf16.mxu0 %v2757_v19  ;;  %2263 = vmatprep.subr.bf16.mxu1 %v2760_v20  ;;  %v1371_v19 = vrot.slane %v1362_v14, %v3398_v58  ;;  %v1379_v20 = vrot.slane %v1362_v14, %v1378_v15 }
 0x6cc   :  { %2223 = vmatpush1.bf16.msra.mxu0 %v2755_v21  ;;  %2264 = vmatpush1.bf16.msra.mxu1 %v2758_v22 }
 0x6cd   :  { %2224 = vmatprep.subr.bf16.mxu0 %v2763_v24  ;;  %2265 = vmatprep.subr.bf16.mxu1 %v2766_v26 }
 0x6d0   :  { %2225 = vmatpush1.bf16.msra.mxu0 %v2761_v27  ;;  %2266 = vmatpush1.bf16.msra.mxu1 %v2764_v28 }
 0x6d1   :  { %2226 = vmatprep.subr.bf16.mxu0 %v2769_v29  ;;  %2267 = vmatprep.subr.bf16.mxu1 %v2772_v31 }
 0x6d4   :  { %2227 = vmatpush1.bf16.msra.mxu0 %v2767_v32  ;;  %2268 = vmatpush1.bf16.msra.mxu1 %v2770_v33 }
 0x6d5   :  { %2228 = vmatprep.subr.bf16.mxu0 %v2775_v4  ;;  %2269 = vmatprep.subr.bf16.mxu1 %v2778_v34 }
 0x6d8   :  { %2229 = vmatpush1.bf16.msra.mxu0 %v2773_v62  ;;  %2270 = vmatpush1.bf16.msra.mxu1 %v2776_v35 }
 0x6d9   :  { %2230 = vmatprep.subr.bf16.mxu0 %v2781_v36  ;;  %2271 = vmatprep.subr.bf16.mxu1 %v2784_v53 }
 0x6dc   :  { %2231 = vmatpush1.bf16.msra.mxu0 %v2779_v37  ;;  %2272 = vmatpush1.bf16.msra.mxu1 %v2782_v38 }
 0x6dd   :  { %2232 = vmatprep.subr.bf16.mxu0 %v2787_v39  ;;  %2273 = vmatprep.subr.bf16.mxu1 %v2790_v49 }
 0x6e0   :  { %2233 = vmatpush1.bf16.msra.mxu0 %v2785_v40  ;;  %2274 = vmatpush1.bf16.msra.mxu1 %v2788_v41 }
 0x6e1   :  { %2234 = vmatprep.subr.bf16.mxu0 %v2793_v42  ;;  %2275 = vmatprep.subr.bf16.mxu1 %v2796_v46  ;;  %v1382_v42 = vsub.s32 4, %v3392_v55  ;;  %v1390_v46 = vsub.s32 6, %v3392_v55 }
 0x6e4   :  { %2235 = vmatpush2.bf16.msra.mxu0 %v2791_v47  ;;  %2276 = vmatpush2.bf16.msra.mxu1 %v2794_v45 }
 0x6e5   :  { %2236 = vmatprep.subr.bf16.mxu0 %v2799_v48  ;;  %2277 = vmatprep.subr.bf16.mxu1 %v2802_v43 }
 0x6e8   :  { %2237 = vmatpush2.bf16.msra.mxu0 %v2797_v44  ;;  %2278 = vmatpush2.bf16.msra.mxu1 %v2800_v50  ;;  %v1386_v50 = vsub.s32 5, %v3392_v55 }
 0x6e9   :  { %2238 = vmatprep.subr.bf16.mxu0 %v2805_v25  ;;  %2279 = vmatprep.subr.bf16.mxu1 %v2808_v51  ;;  %v1394_v25 = vsub.s32 7, %v3392_v55 }
 0x6ec   :  { %2239 = vmatpush2.bf16.msra.mxu0 %v2803_v52  ;;  %2280 = vmatpush2.bf16.msra.mxu1 %v2806_v54 }
 0x6ed   :  { %2240 = vmatprep.subr.bf16.mxu0 %v2811_v57  ;;  %2281 = vmatprep.subr.bf16.mxu1 %v2814_v30  ;;  %v1383_v57 = vrot.slane %v1362_v14, %v1382_v42  ;;  %v1391_v30 = vrot.slane %v1362_v14, %v1390_v46 }
 0x6f0   :  { %2241 = vmatpush2.bf16.msra.mxu0 %v2809_v11  ;;  %2282 = vmatpush2.bf16.msra.mxu1 %v2812_v59  ;;  %v1387_v59 = vrot.slane %v1362_v14, %v1386_v50 }
 0x6f1   :  { %2242 = vmatprep.subr.bf16.mxu0 %v2817_v17  ;;  %2283 = vmatprep.subr.bf16.mxu1 %v2820_v60  ;;  %v1395_v17 = vrot.slane %v1362_v14, %v1394_v25 }
 0x6f4   :  { %2243 = vmatpush2.bf16.msra.mxu0 %v2815_v61  ;;  %2284 = vmatpush2.bf16.msra.mxu1 %v2818_v63 }
 0x6f5   :  { %2244 = vmatprep.subr.bf16.mxu0 %v2823_v0  ;;  %2285 = vmatprep.subr.bf16.mxu1 %v2826_v1 }
 0x6f8   :  { %2245 = vmatpush2.bf16.msra.mxu0 %v2821_v23  ;;  %2286 = vmatpush2.bf16.msra.mxu1 %v2824_v2 }
 0x6f9   :  { %2246 = vmatprep.subr.bf16.mxu0 %v2829_v5  ;;  %2287 = vmatprep.subr.bf16.mxu1 %v2832_v7 }
 0x6fc   :  { %2247 = vmatpush2.bf16.msra.mxu0 %v2827_v3  ;;  %2288 = vmatpush2.bf16.msra.mxu1 %v2830_v6 }
 0x6fd   :  { %2248 = vmatprep.subr.bf16.mxu0 %v2835_v8  ;;  %2289 = vmatprep.subr.bf16.mxu1 %v2838_v9 }
 0x700   :  { %2249 = vmatpush2.bf16.msra.mxu0 %v2833_v10  ;;  %2290 = vmatpush2.bf16.msra.mxu1 %v2836_v12 }
 0x773   :  { %v1601_v21 = vpop.f32.mrf.mxu0  ;;  %v1642_v22 = vpop.f32.mrf.mxu1 }
 0x774   :  { %v3709_v24 = vadd.f32 %v1601_v21, %v1367_v16  ;;  %v3711_v26 = vadd.f32 %v1642_v22, %v1375_v18 }
 0x775   :  { %v1603_v27 = vpop.f32.mrf.mxu0  ;;  %v1644_v28 = vpop.f32.mrf.mxu1 }
 0x776   :  { %v1731_v29 = vmul.f32 %v3709_v24, %v3709_v24  ;;  %v1733_v31 = vmul.f32 %v3711_v26, %v3711_v26  ;;  %v3717_v32 = vadd.f32 %v1603_v27, %v1371_v19  ;;  %v3719_v33 = vadd.f32 %v1644_v28, %v1379_v20 }
 0x777   :  { %v1605_v4 = vpop.f32.mrf.mxu0  ;;  %v1646_v34 = vpop.f32.mrf.mxu1 }
 0x778   :  { %v1739_v62 = vmul.f32 %v1731_v29, %v3709_v24  ;;  %v1741_v35 = vmul.f32 %v1733_v31, %v3711_v26  ;;  %v1732_v36 = vmul.f32 %v3717_v32, %v3717_v32  ;;  %v1734_v53 = vmul.f32 %v3719_v33, %v3719_v33 }
 0x779   :  { %v1606_v37 = vpop.f32.mrf.mxu0  ;;  %v1647_v38 = vpop.f32.mrf.mxu1 }
 0x77a   :  { %v1747_v39 = vmul.f32 0.044715, %v1739_v62  ;;  %v1749_v49 = vmul.f32 0.044715, %v1741_v35  ;;  %v1740_v40 = vmul.f32 %v1732_v36, %v3717_v32  ;;  %v1742_v41 = vmul.f32 %v1734_v53, %v3719_v33 }
 0x77c   :  { %v1755_v47 = vadd.f32 %v1747_v39, %v3709_v24  ;;  %v1757_v45 = vadd.f32 %v1749_v49, %v3711_v26  ;;  %v1748_v48 = vmul.f32 0.044715, %v1740_v40  ;;  %v1750_v43 = vmul.f32 0.044715, %v1742_v41 }
 0x77e   :  { %v1756_v44 = vadd.f32 %v1748_v48, %v3717_v32  ;;  %v1763_v51 = vmul.f32 0.7978846, %v1755_v47  ;;  %v1758_v52 = vadd.f32 %v1750_v43, %v3719_v33  ;;  %v1765_v54 = vmul.f32 0.7978846, %v1757_v45 }
 0x780   :  { %v1764_v11 = vmul.f32 0.7978846, %v1756_v44  ;;  %2867 = vtanh.f32 %v1763_v51  ;;  %v1766_v60 = vmul.f32 0.7978846, %v1758_v52 }
 0x781   :  { %2869 = vtanh.f32 %v1765_v54 }
 0x782   :  { %2871 = vtanh.f32 %v1764_v11 }
 0x783   :  { %v1683_v61 = vpop.f32.mrf.mxu0  ;;  %v1724_v63 = vpop.f32.mrf.mxu1  ;;  %2873 = vtanh.f32 %v1766_v60 }
 0x784   :  { %v3737_v0 = vadd.f32 %v1683_v61, %v1383_v57  ;;  %v3739_v1 = vadd.f32 %v1724_v63, %v1391_v30 }
 0x785   :  { %v1685_v23 = vpop.f32.mrf.mxu0  ;;  %v1726_v2 = vpop.f32.mrf.mxu1 }
 0x786   :  { %v1735_v3 = vmul.f32 %v3737_v0, %v3737_v0  ;;  %v1737_v5 = vmul.f32 %v3739_v1, %v3739_v1  ;;  %v1686_v6 = vadd.f32 %v1685_v23, %v1387_v59  ;;  %v1727_v7 = vadd.f32 %v1726_v2, %v1395_v17 }
 0x787   :  { %v1687_v8 = vpop.f32.mrf.mxu0  ;;  %v1728_v9 = vpop.f32.mrf.mxu1 }
 0x788   :  { %v1743_v10 = vmul.f32 %v1735_v3, %v3737_v0  ;;  %v1745_v12 = vmul.f32 %v1737_v5, %v3739_v1  ;;  %v1736_v14 = vmul.f32 %v1686_v6, %v1686_v6  ;;  %v1738_v16 = vmul.f32 %v1727_v7, %v1727_v7 }
 0x789   :  { %v1688_v18 = vpop.f32.mrf.mxu0  ;;  %v1729_v19 = vpop.f32.mrf.mxu1 }
 0x78a   :  { %v1751_v20 = vmul.f32 0.044715, %v1743_v10  ;;  %v1753_v21 = vmul.f32 0.044715, %v1745_v12  ;;  %v1744_v22 = vmul.f32 %v1736_v14, %v1686_v6  ;;  %v1746_v27 = vmul.f32 %v1738_v16, %v1727_v7 }
 0x78b   :  { %v2975_v19 = vmov 1983009808  }
 0x78c   :  { %v1759_v28 = vadd.f32 %v1751_v20, %v3737_v0  ;;  %v1761_v29 = vadd.f32 %v1753_v21, %v3739_v1  ;;  %v1752_v31 = vmul.f32 0.044715, %v1744_v22  ;;  %v1754_v4 = vmul.f32 0.044715, %v1746_v27 }
 0x78d   :  { %v2868_v53 = vpop.eup %2867  ;;  %v2307_v20 = vunpack.c.l.s4 %v2975_v19 }
 0x78e   :  { %v1767_v34 = vmul.f32 0.7978846, %v1759_v28  ;;  %v1769_v62 = vmul.f32 0.7978846, %v1761_v29  ;;  %v1760_v35 = vadd.f32 %v1752_v31, %v1686_v6  ;;  %v1762_v36 = vadd.f32 %v1754_v4, %v1727_v7  ;;  %v2870_v38 = vpop.eup %2869 }
 0x78f   :  { %v2872_v49 = vpop.eup %2871  ;;  %v1779_v41 = vadd.f32 1.0, %v2868_v53  ;;  %v1781_v42 = vadd.f32 1.0, %v2870_v38 }
 0x790   :  { %2875 = vtanh.f32 %v1767_v34  ;;  %v1768_v37 = vmul.f32 0.7978846, %v1760_v35  ;;  %v1770_v39 = vmul.f32 0.7978846, %v1762_v36  ;;  %v2874_v40 = vpop.eup %2873  ;;  %v1780_v46 = vadd.f32 1.0, %v2872_v49 }
 0x791   :  { %2877 = vtanh.f32 %v1769_v62  ;;  %v1782_v47 = vadd.f32 1.0, %v2874_v40  ;;  %v1787_v45 = vmul.f32 0.5, %v1779_v41  ;;  %v1789_v48 = vmul.f32 0.5, %v1781_v42 }
 0x792   :  { %2879 = vtanh.f32 %v1768_v37  ;;  %v1788_v43 = vmul.f32 0.5, %v1780_v46 }
 0x793   :  { %2881 = vtanh.f32 %v1770_v39  ;;  %v1790_v44 = vmul.f32 0.5, %v1782_v47  ;;  %v1795_v51 = vmul.f32 %v1787_v45, %v3709_v24  ;;  %v1797_v52 = vmul.f32 %v1789_v48, %v3711_v26 }
 0x794   :  { %v1796_v59 = vmul.f32 %v1788_v43, %v3717_v32 }
 0x795   :  { %v1798_v17 = vmul.f32 %v1790_v44, %v3719_v33  ;;  %v1803_v2 = vadd.f32 %v1797_v52, %v1795_v51 }
 0x797   :  { %v1804_v9 = vadd.f32 %v1798_v17, %v1796_v59 }
 0x79d   :  { %v2876_v50 = vpop.eup %2875 }
 0x79e   :  { %v2878_v25 = vpop.eup %2877  ;;  %v1783_v54 = vadd.f32 1.0, %v2876_v50 }
 0x79f   :  { %v2880_v57 = vpop.eup %2879  ;;  %v1785_v30 = vadd.f32 1.0, %v2878_v25 }
 0x7a0   :  { %v2882_v11 = vpop.eup %2881  ;;  %v1791_v60 = vmul.f32 0.5, %v1783_v54  ;;  %v1784_v61 = vadd.f32 1.0, %v2880_v57 }
 0x7a1   :  { %v1793_v63 = vmul.f32 0.5, %v1785_v30  ;;  %v1786_v23 = vadd.f32 1.0, %v2882_v11 }
 0x7a2   :  { %v1799_v3 = vmul.f32 %v1791_v60, %v3737_v0  ;;  %v1792_v5 = vmul.f32 0.5, %v1784_v61  ;;  %v2458_v0 = vld [vmem:[%s3771_s3 + $0x1] ss:$2 sm:$0xf]  ;;  %s2976_s3 = smov [#allocation8]  }
 0x7a3   :  { %v1794_v8 = vmul.f32 0.5, %v1786_v23  ;;  %v1801_v10 = vmul.f32 %v1793_v63, %v3739_v1  ;;  %v1881_v21 = vrot.slane %v2458_v0, %v3395_v56  ;;  %v1889_v1 = vrot.slane %v2458_v0, %v1374_v13  ;;  %s2329_s24 = sshll.u32 %s2976_s3, 4  ;;  %s2330_s24 = int_to_ptr.vmem [resolvable:$true] %s2329_s24 }
 0x7a4   :  { %v1800_v24 = vmul.f32 %v1792_v5, %v1686_v6  ;;  %v1805_v26 = vadd.f32 %v1803_v2, %v1799_v3  ;;  %v2308_v6 = vunpack.c.0.s8 %v2307_v20  ;;  %v1893_v22 = vrot.slane %v2458_v0, %v1378_v15  ;;  %s2923_s0 = scalar_lea.vmem %s2330_s24, 128  ;;  %p2928_p11 = scmp.lt.s32.totalorder %s2330_s24, %s2330_s24 }
 0x7a5   :  { %v1802_v12 = vmul.f32 %v1794_v8, %v1727_v7  ;;  %v1885_v7 = vrot.slane %v2458_v0, %v3398_v58  ;;  %p2924_p10 = scmp.ne.s32.totalorder %s2330_s24, %s2923_s0  ;;  %p2929_p12 = scmp.lt.s32.totalorder %s2923_s0, %s2923_s0 }
 0x7a6   :  { %v1806_v14 = vadd.f32 %v1804_v9, %v1800_v24  ;;  %v1807_v16 = vadd.f32 %v1805_v26, %v1801_v10  ;;  %v2311_v31 = vsub.s32 %v2308_v6, %v3392_v55 }
 0x7a7   :  { %p2930_p13 = por %p2929_p12, %p2928_p11 }
 0x7a8   :  { %v1808_v32 = vadd.f32 %v1806_v14, %v1802_v12  ;;  %v1809_v33 = vpack.c.bf16 %v1807_v16, %v1807_v16 }
 0x7a9   :  { %p2931_p0 = pnand %p2930_p13, %p2924_p10 }
 0x7aa   :  { %v1810_v18 = vpack.c.bf16 %v1808_v32, %v1808_v32 }
 0x7ac   :  { %2250 = vmatprep.mubr.bf16.mxu0 %v1810_v18  ;;  %2291 = vmatprep.mubr.bf16.mxu1 %v1810_v18 }
 0x7ad   :  { %2251 = vmatmul.mubr.bf16.vlgmr.msra.gmra.mxu0 %v1809_v33  ;;  %2292 = vmatmul.mubr.bf16.vlgmr.msra.gmra.mxu1 %v1809_v33 }
 0x86d   :  { %v2252_v27 = vpop.f32.mrf.mxu0  ;;  %v2293_v28 = vpop.f32.mrf.mxu1 }
 0x86e   :  { %v2253_v34 = vadd.f32 %v2252_v27, %v1881_v21  ;;  %v2294_v62 = vadd.f32 %v2293_v28, %v1889_v1 }
 0x86f   :  { %v2254_v29 = vpop.f32.mrf.mxu0  ;;  %v2295_v4 = vpop.f32.mrf.mxu1 }
 0x870   :  { %v2255_v35 = vadd.f32 %v2254_v29, %v1885_v7  ;;  %v2296_v36 = vadd.f32 %v2295_v4, %v1893_v22 }
 0x871   :  { %v2256_v53 = vpop.f32.mrf.mxu0  ;;  %v2297_v56 = vpop.f32.mrf.mxu1 }
 0x872   :  { %v2304_v37 = vcombine.low %v2253_v34, %v2255_v35  ;;  %v2305_v38 = vcombine.low %v2294_v62, %v2296_v36 }
 0x873   :  { %v2257_v13 = vpop.f32.mrf.mxu0  ;;  %v2298_v39 = vpop.f32.mrf.mxu1 }
 0x874   :  { %v2312_v58 = vrot.slane %v2304_v37, %v2311_v31  ;;  %v2319_v15 = vrot.slane %v2305_v38, %v2311_v31 }
 0x876   :  { %v2320_v49 = vcombine.low %v2312_v58, %v2319_v15 }
 0x878   :  { %2322 = vst [vmem:[#allocation8] sm:$0xff] %v2320_v49 }
 0x879   :  { %2934 = shalt.err (!%p2931_p0)
}
 0x87a   :  { %2332 = dma.vmem_to_hbm [thread:$0]  %s2330_s24, 128, %s3774_s6, [#allocation5]  }
 0x87b   :  { %2947 = dma.done.wait [#allocation5], 128  }
 0x87c   :  { %2948 = vsyncadd [#allocation5], 4294967168 }
 0x87d   :  { %2336 = vsyncpa [#allocation4], 1 }
 0x87e   :  { %2337 = vsyncpa [#allocation7], 1 }
 0x87f   :  { %2338 = vsyncpa [#allocation5], 1 }

</bundles_post_ra>
